<compile_context>
chip_gen: v5e
topology: v5e:2x2
jax: 0.10.0
libtpu: 0.0.40
codegen_flags: <defaults>
</compile_context>

<pallas_src>
import jax
import jax.numpy as jnp
from jax.experimental import pallas as pl
from jax.experimental.pallas import tpu as pltpu

HIDDEN = 768          # Bio_ClinicalBERT hidden size
NUM_CLASSES = 2       # nn.Linear(768, 2)
CLS_PAD = 128         # pad class dim to one full lane group for a dense store
MAX_TILE_M = 128      # batch rows per grid step


def _round_up(x, m):
    return (x + m - 1) // m * m


def _pooler_head_kernel(x_ref, wp_ref, bp_ref, wc_ref, bc_ref, out_ref):
    """pooled = tanh(cls @ Wp + bp); logits = pooled @ Wc + bc.

    x_ref   : (tm, 768)  f32   CLS hidden states for this batch tile
    wp_ref  : (768, 768) bf16  pooler weight (x @ W layout), VMEM-resident
    bp_ref  : (1, 768)   f32   pooler bias
    wc_ref  : (768, 128) bf16  classifier weight, zero-padded 2 -> 128 lanes
    bc_ref  : (1, 128)   f32   classifier bias, zero-padded
    out_ref : (tm, 128)  f32   padded logits (first 2 lanes are the real logits)
    """
    cls = x_ref[...].astype(jnp.bfloat16)                      # bf16 into the MXU
    pooled = jnp.tanh(                                         # f32 accumulate, f32 tanh (EUP)
        jnp.dot(cls, wp_ref[...], preferred_element_type=jnp.float32) + bp_ref[...]
    )
    logits = (
        jnp.dot(pooled.astype(jnp.bfloat16), wc_ref[...],
                preferred_element_type=jnp.float32)
        + bc_ref[...]
    )
    out_ref[...] = logits.astype(out_ref.dtype)


def prepare_params(w_pool, b_pool, w_cls, b_cls):
    """One-time parameter prep (hoisted out of the per-call hot path).

    Inputs are in PyTorch nn.Linear layout: weight (out_features, in_features).
    Returns (x @ W)-layout bf16 matmul weights, f32 biases, classifier padded
    to 128 lanes (padding is explicitly zero so discarded lanes stay zero).
    """
    wp = jnp.asarray(w_pool, jnp.float32).T.astype(jnp.bfloat16)          # (768, 768)
    bp = jnp.asarray(b_pool, jnp.float32).reshape(1, HIDDEN)              # (1, 768)
    wc_t = jnp.asarray(w_cls, jnp.float32).T.astype(jnp.bfloat16)         # (768, 2)
    wc = jnp.zeros((HIDDEN, CLS_PAD), jnp.bfloat16).at[:, :NUM_CLASSES].set(wc_t)
    bc = jnp.zeros((1, CLS_PAD), jnp.float32).at[0, :NUM_CLASSES].set(
        jnp.asarray(b_cls, jnp.float32))
    return wp, bp, wc, bc


def pooler_and_linear(hidden_states, params):
    """hidden_states: (B, S, 768) f32 BERT last_hidden_state; returns (B, 2) logits."""
    wp, bp, wc, bc = params
    B, S, H = hidden_states.shape
    assert H == HIDDEN

    # Fused CLS extraction: free row-major reshape to (B, S*H); the CLS token is
    # columns [0, HIDDEN) and the BlockSpec below DMAs only those columns.
    x2d = hidden_states.reshape(B, S * H)

    # Batch padding / tiling: sublane-align small batches; 128-row tiles for
    # large batches so the parallel grid axis shards across TensorCores.
    if B <= MAX_TILE_M:
        b_pad = _round_up(B, 8)
        tm = b_pad
    else:
        b_pad = _round_up(B, MAX_TILE_M)
        tm = MAX_TILE_M
    if b_pad != B:
        x2d = jnp.pad(x2d, ((0, b_pad - B), (0, 0)))
    grid = (b_pad // tm,)

    cost = pl.CostEstimate(
        flops=2 * b_pad * HIDDEN * (HIDDEN + CLS_PAD),
        transcendentals=b_pad * HIDDEN,
        bytes_accessed=(
            b_pad * HIDDEN * 4            # CLS activations (f32)
            + HIDDEN * HIDDEN * 2         # pooler weight (bf16)
            + HIDDEN * 4                  # pooler bias (f32)
            + HIDDEN * CLS_PAD * 2        # classifier weight (bf16)
            + CLS_PAD * 4                 # classifier bias (f32)
            + b_pad * CLS_PAD * 4         # padded logits out (f32)
        ),
    )

    out_padded = pl.pallas_call(
        _pooler_head_kernel,
        out_shape=jax.ShapeDtypeStruct((b_pad, CLS_PAD), jnp.float32),
        grid=grid,
        in_specs=[
            pl.BlockSpec((tm, HIDDEN), lambda i: (i, 0)),       # CLS columns only
            pl.BlockSpec((HIDDEN, HIDDEN), lambda i: (0, 0)),   # weights: constant index
            pl.BlockSpec((1, HIDDEN), lambda i: (0, 0)),        #   -> stay VMEM-resident
            pl.BlockSpec((HIDDEN, CLS_PAD), lambda i: (0, 0)),
            pl.BlockSpec((1, CLS_PAD), lambda i: (0, 0)),
        ],
        out_specs=pl.BlockSpec((tm, CLS_PAD), lambda i: (i, 0)),
        compiler_params=pltpu.CompilerParams(
            dimension_semantics=("parallel",),
        ),
        cost_estimate=cost,
    )(x2d, wp, bp, wc, bc)

    return out_padded[:B, :NUM_CLASSES]                        # (B, 2)


def init_params(key):
    """Deterministic synthetic parameters in PyTorch nn.Linear layout (out, in)."""
    k1, k2, k3, k4 = jax.random.split(key, 4)
    scale = 1.0 / jnp.sqrt(jnp.float32(HIDDEN))
    w_pool = jax.random.normal(k1, (HIDDEN, HIDDEN), jnp.float32) * scale
    b_pool = jax.random.normal(k2, (HIDDEN,), jnp.float32) * 0.01
    w_cls = jax.random.normal(k3, (NUM_CLASSES, HIDDEN), jnp.float32) * scale
    b_cls = jax.random.normal(k4, (NUM_CLASSES,), jnp.float32) * 0.01
    return w_pool, b_pool, w_cls, b_cls


if __name__ == "__main__":
    key = jax.random.PRNGKey(0)
    k_x, k_params = jax.random.split(key)

    B, S = 2, 8                                                # small batch / seq
    hidden_states = jax.random.normal(k_x, (B, S, HIDDEN), jnp.float32)
    w_pool, b_pool, w_cls, b_cls = init_params(k_params)

    params = prepare_params(w_pool, b_pool, w_cls, b_cls)      # one-time prep
    logits = pooler_and_linear(hidden_states, params)
    logits = jax.block_until_ready(logits)

    # Pure-JAX f32 reference (PyTorch semantics: y = x @ W.T + b).
    cls_x = hidden_states[:, 0, :]
    ref = jnp.tanh(cls_x @ w_pool.T + b_pool) @ w_cls.T + b_cls
    assert logits.shape == (B, NUM_CLASSES)
    # bf16 matmul inputs with f32 accumulation -> relaxed tolerance vs f32 ref.
    assert jnp.allclose(logits, ref, atol=3e-2, rtol=3e-2)

    print("KERNEL_OK")
</pallas_src>

<mosaic_0001>
module attributes {stable_mosaic.version = 11 : i64} {
  func.func @_pooler_head_kernel(%arg0: i32, %arg1: memref<8x768xf32, #tpu.memory_space<vmem>>, %arg2: memref<768x768xbf16, #tpu.memory_space<vmem>>, %arg3: memref<1x768xf32, #tpu.memory_space<vmem>>, %arg4: memref<768x128xbf16, #tpu.memory_space<vmem>>, %arg5: memref<1x128xf32, #tpu.memory_space<vmem>>, %arg6: memref<8x128xf32, #tpu.memory_space<vmem>>) attributes {dimension_semantics = [#tpu.dimension_semantics<parallel>], iteration_bounds = array<i64: 1>, scalar_prefetch = 0 : i64, scratch_operands = 0 : i64, tpu.core_type = #tpu.core_type<tc>, window_params = [{transform_indices = @transform_0, window_bounds = array<i64: 8, 768>}, {pipeline_mode = #tpu.pipeline_mode<synchronous>, transform_indices = @transform_1, window_bounds = array<i64: 768, 768>}, {pipeline_mode = #tpu.pipeline_mode<synchronous>, transform_indices = @transform_2, window_bounds = array<i64: 1, 768>}, {pipeline_mode = #tpu.pipeline_mode<synchronous>, transform_indices = @transform_3, window_bounds = array<i64: 768, 128>}, {pipeline_mode = #tpu.pipeline_mode<synchronous>, transform_indices = @transform_4, window_bounds = array<i64: 1, 128>}, {transform_indices = @transform_5, window_bounds = array<i64: 8, 128>}]} {
    %c0 = arith.constant 0 : index
    %c0_0 = arith.constant 0 : index
    %0 = vector.load %arg1[%c0, %c0_0] : memref<8x768xf32, #tpu.memory_space<vmem>>, vector<8x768xf32>
    %1 = arith.truncf %0 : vector<8x768xf32> to vector<8x768xbf16>
    %c0_1 = arith.constant 0 : index
    %c0_2 = arith.constant 0 : index
    %2 = vector.load %arg2[%c0_1, %c0_2] : memref<768x768xbf16, #tpu.memory_space<vmem>>, vector<768x768xbf16>
    %cst = arith.constant dense<0.000000e+00> : vector<8x768xf32>
    %3 = tpu.matmul %1, %2, %cst {dimension_numbers = #tpu.dot_dimension_numbers<[1], [0], [0], [1], [0, 0, 1, 1], [], []>} : vector<8x768xbf16>, vector<768x768xbf16>, vector<8x768xf32> -> vector<8x768xf32>
    %c0_3 = arith.constant 0 : index
    %c0_4 = arith.constant 0 : index
    %4 = vector.load %arg3[%c0_3, %c0_4] : memref<1x768xf32, #tpu.memory_space<vmem>>, vector<1x768xf32>
    %5 = vector.broadcast %4 : vector<1x768xf32> to vector<8x768xf32>
    %6 = arith.addf %3, %5 : vector<8x768xf32>
    %7 = math.tanh %6 : vector<8x768xf32>
    %8 = arith.truncf %7 : vector<8x768xf32> to vector<8x768xbf16>
    %c0_5 = arith.constant 0 : index
    %c0_6 = arith.constant 0 : index
    %9 = vector.load %arg4[%c0_5, %c0_6] : memref<768x128xbf16, #tpu.memory_space<vmem>>, vector<768x128xbf16>
    %cst_7 = arith.constant dense<0.000000e+00> : vector<8x128xf32>
    %10 = tpu.matmul %8, %9, %cst_7 {dimension_numbers = #tpu.dot_dimension_numbers<[1], [0], [0], [1], [0, 0, 1, 1], [], []>} : vector<8x768xbf16>, vector<768x128xbf16>, vector<8x128xf32> -> vector<8x128xf32>
    %c0_8 = arith.constant 0 : index
    %c0_9 = arith.constant 0 : index
    %11 = vector.load %arg5[%c0_8, %c0_9] : memref<1x128xf32, #tpu.memory_space<vmem>>, vector<1x128xf32>
    %12 = vector.broadcast %11 : vector<1x128xf32> to vector<8x128xf32>
    %13 = arith.addf %10, %12 : vector<8x128xf32>
    %c0_10 = arith.constant 0 : index
    %c0_11 = arith.constant 0 : index
    %14 = vector.load %arg6[%c0_10, %c0_11] : memref<8x128xf32, #tpu.memory_space<vmem>>, vector<8x128xf32>
    tpu.vector_store %arg6[%c0_10, %c0_11], %13 {strides = array<i32>} : memref<8x128xf32, #tpu.memory_space<vmem>>, vector<8x128xf32>,
    return
  }
  func.func @transform_0(%arg0: i32) -> (i32, i32) {
    %c0_i32 = arith.constant 0 : i32
    %c0_i32_0 = arith.constant 0 : i32
    return %arg0, %c0_i32 : i32, i32
  }
  func.func @transform_1(%arg0: i32) -> (i32, i32) {
    %c0_i32 = arith.constant 0 : i32
    %c0_i32_0 = arith.constant 0 : i32
    %c0_i32_1 = arith.constant 0 : i32
    return %c0_i32, %c0_i32_0 : i32, i32
  }
  func.func @transform_2(%arg0: i32) -> (i32, i32) {
    %c0_i32 = arith.constant 0 : i32
    %c0_i32_0 = arith.constant 0 : i32
    %c0_i32_1 = arith.constant 0 : i32
    return %c0_i32, %c0_i32_0 : i32, i32
  }
  func.func @transform_3(%arg0: i32) -> (i32, i32) {
    %c0_i32 = arith.constant 0 : i32
    %c0_i32_0 = arith.constant 0 : i32
    %c0_i32_1 = arith.constant 0 : i32
    return %c0_i32, %c0_i32_0 : i32, i32
  }
  func.func @transform_4(%arg0: i32) -> (i32, i32) {
    %c0_i32 = arith.constant 0 : i32
    %c0_i32_0 = arith.constant 0 : i32
    %c0_i32_1 = arith.constant 0 : i32
    return %c0_i32, %c0_i32_0 : i32, i32
  }
  func.func @transform_5(%arg0: i32) -> (i32, i32) {
    %c0_i32 = arith.constant 0 : i32
    %c0_i32_0 = arith.constant 0 : i32
    return %arg0, %c0_i32 : i32, i32
  }
}

</mosaic_0001>

<bundles_post_ra>
// kernel: tpu_custom_call.1
= control target key start
LH: loop header
LB: loop body
LE: loop exit
PB: predicated region body
PF: predicated region fallthrough
CT: control target
= control target key end

     0   :  { %10 = vsyncpa [#allocation3], 0  ;;  %s4809_s0 = inlined_call_operand.hbm [shape: f32[8,6144], index: 0, kind: input, shape index: {}]   ;;  %s4810_s1 = inlined_call_operand.hbm [shape: bf16[768,768], index: 1, kind: input, shape index: {}]   ;;  %s4811_s2 = inlined_call_operand.hbm [shape: f32[1,768], index: 2, kind: input, shape index: {}]   ;;  %s4812_s3 = inlined_call_operand.hbm [shape: bf16[768,128], index: 3, kind: input, shape index: {}]   ;;  %s4813_s4 = inlined_call_operand.hbm [shape: f32[1,128], index: 4, kind: input, shape index: {}]   ;;  %s4814_s5 = inlined_call_operand.hbm [shape: f32[8,128], index: 5, kind: output, shape index: {}]  }
   0x1   :  { %11 = vsyncpa [#allocation6], 0 }
   0x2   :  { %12 = vsyncpa [#allocation9], 0  ;;  %s29_s20 = sshll.u32 %s4810_s1, 4  ;;  %s30_s20 = int_to_ptr.hbm [resolvable:$true] %s29_s20 }
   0x3   :  { %13 = vsyncpa [#allocation4], 0  ;;  %s4669_s21 = smov [#allocation5]   ;;  %s53_s25 = sshll.u32 %s4812_s3, 4  ;;  %s54_s25 = int_to_ptr.hbm [resolvable:$true] %s53_s25 }
   0x4   :  { %s31_s22 = sshll.u32 %s4669_s21, 4  ;;  %s4670_s26 = smov 384   ;;  %s32_s22 = int_to_ptr.vmem [resolvable:$true] %s31_s22 }
   0x5   :  { %s4671_s27 = smov 24   ;;  %s4672_s28 = smov [#allocation8]  }
   0x6   :  { %37 = dma.hbm_to_vmem [thread:$0]  %s30_s20, 36864, %s32_s22, [#allocation6], %s4670_s26, %s4670_s26, %s4671_s27  }
   0x7   :  { %s55_s29 = sshll.u32 %s4672_s28, 4  ;;  %s4673_s30 = smov 64   ;;  %s56_s29 = int_to_ptr.vmem [resolvable:$true] %s55_s29 }
   0x8   :  { %s4674_s6 = smov 4   ;;  %s19_s8 = sshll.u32 %s4809_s0, 4  ;;  %s20_s8 = int_to_ptr.hbm [resolvable:$true] %s19_s8 }
   0x9   :  { %61 = dma.hbm_to_vmem [thread:$0]  %s54_s25, 6144, %s56_s29, [#allocation9], %s4673_s30, %s4673_s30, %s4674_s6  }
   0xa   :  { %s4675_s9 = smov [#allocation2]   ;;  %s43_s12 = sshll.u32 %s4811_s2, 4  ;;  %s44_s12 = int_to_ptr.hbm [resolvable:$true] %s43_s12 }
   0xb   :  { %s21_s10 = sshll.u32 %s4675_s9, 4  ;;  %s4676_s13 = smov [#allocation7]   ;;  %s22_s10 = int_to_ptr.vmem [resolvable:$true] %s21_s10 }
   0xc   :  { %24 = dma.hbm_to_vmem [thread:$0]  %s20_s8, 768, %s22_s10, [#allocation3]  }
   0xd   :  { %s45_s14 = sshll.u32 %s4676_s13, 4  ;;  %s67_s17 = sshll.u32 %s4813_s4, 4  ;;  %s46_s14 = int_to_ptr.vmem [resolvable:$true] %s45_s14  ;;  %s68_s17 = int_to_ptr.hbm [resolvable:$true] %s67_s17 }
   0xe   :  { %48 = dma.hbm_to_vmem [thread:$0]  %s44_s12, 96, %s46_s14, [#allocation6]  }
   0xf   :  { %s4677_s0 = smov [#allocation10]  }
  0x10   :  { %s69_s18 = sshll.u32 %s4677_s0, 4  ;;  %s70_s18 = int_to_ptr.vmem [resolvable:$true] %s69_s18 }
  0x11   :  { %72 = dma.hbm_to_vmem [thread:$0]  %s68_s17, 16, %s70_s18, [#allocation9]  }
  0x12   :  { %4661 = dma.done.wait [#allocation3], 768  }
  0x13   :  { %4662 = vsyncadd [#allocation3], 4294966528 }
  0x14   :  { %4663 = dma.done.wait [#allocation6], 36960  }
  0x15   :  { %4664 = vsyncadd [#allocation6], 4294930336 }
  0x16   :  { %4665 = dma.done.wait [#allocation9], 6160  }
  0x17   :  { %4666 = vsyncadd [#allocation9], 4294961136  ;;  %v2983_v0 = vld [vmem:[#allocation5 + $0x150] sm:$0xf]  ;;  %v4202_v1 = vld [vmem:[#allocation5 + $0x164] sm:$0xf0] }
  0x18   :  { %v3175_v2 = vld [vmem:[#allocation5 + $0x2d0] sm:$0xf]  ;;  %v2984_v3 = vor.u32 %v4202_v1, %v2983_v0  ;;  %v4250_v4 = vld [vmem:[#allocation5 + $0x2e4] sm:$0xf0]  ;;  %v2959_v11 = vld [vmem:[#allocation5 + $0x120] sm:$0xf] }
  0x19   :  { %v3367_v5 = vld [vmem:[#allocation5 + $0x450] sm:$0xf]  ;;  %v4298_v6 = vld [vmem:[#allocation5 + $0x464] sm:$0xf0]  ;;  %v3176_v7 = vor.u32 %v4250_v4, %v3175_v2  ;;  %v4196_v13 = vld [vmem:[#allocation5 + $0x134] sm:$0xf0] }
  0x1a   :  { %v3368_v8 = vor.u32 %v4298_v6, %v3367_v5  ;;  %v3559_v9 = vld [vmem:[#allocation5 + $0x5d0] sm:$0xf]  ;;  %v4346_v10 = vld [vmem:[#allocation5 + $0x5e4] sm:$0xf0]  ;;  %1847 = vmatpush.bf16.msra.mxu0 %v2984_v3  ;;  %v3151_v14 = vld [vmem:[#allocation5 + $0x2a0] sm:$0xf]  ;;  %v2960_v16 = vor.u32 %v4196_v13, %v2959_v11 }
  0x1b   :  { %v3560_v12 = vor.u32 %v4346_v10, %v3559_v9  ;;  %v4244_v15 = vld [vmem:[#allocation5 + $0x2b4] sm:$0xf0]  ;;  %1860 = vmatpush.bf16.msra.mxu1 %v3176_v7  ;;  %v3343_v18 = vld [vmem:[#allocation5 + $0x420] sm:$0xf]  ;;  %v2935_v23 = vld [vmem:[#allocation5 + $0xf0] sm:$0xf] }
  0x1c   :  { %1873 = vmatpush.bf16.msra.mxu2 %v3368_v8  ;;  %v3152_v17 = vor.u32 %v4244_v15, %v3151_v14  ;;  %v4292_v19 = vld [vmem:[#allocation5 + $0x434] sm:$0xf0]  ;;  %v3535_v20 = vld [vmem:[#allocation5 + $0x5a0] sm:$0xf]  ;;  %v4190_v24 = vld [vmem:[#allocation5 + $0x104] sm:$0xf0] }
  0x1d   :  { %1886 = vmatpush.bf16.msra.mxu3 %v3560_v12  ;;  %v3344_v21 = vor.u32 %v4292_v19, %v3343_v18  ;;  %v4340_v22 = vld [vmem:[#allocation5 + $0x5b4] sm:$0xf0]  ;;  %v3127_v26 = vld [vmem:[#allocation5 + $0x270] sm:$0xf]  ;;  %v4238_v27 = vld [vmem:[#allocation5 + $0x284] sm:$0xf0]  ;;  %v2936_v29 = vor.u32 %v4190_v24, %v2935_v23 }
  0x1e   :  { %v3536_v25 = vor.u32 %v4340_v22, %v3535_v20  ;;  %v3319_v28 = vld [vmem:[#allocation5 + $0x3f0] sm:$0xf]  ;;  %1848 = vmatpush.bf16.msra.mxu0 %v2960_v16  ;;  %v4286_v30 = vld [vmem:[#allocation5 + $0x404] sm:$0xf0]  ;;  %v3128_v33 = vor.u32 %v4238_v27, %v3127_v26  ;;  %v2911_v35 = vld [vmem:[#allocation5 + $0xc0] sm:$0xf] }
  0x1f   :  { %v3511_v31 = vld [vmem:[#allocation5 + $0x570] sm:$0xf]  ;;  %v4334_v32 = vld [vmem:[#allocation5 + $0x584] sm:$0xf0]  ;;  %1861 = vmatpush.bf16.msra.mxu1 %v3152_v17  ;;  %v3320_v34 = vor.u32 %v4286_v30, %v3319_v28  ;;  %v4184_v36 = vld [vmem:[#allocation5 + $0xd4] sm:$0xf0] }
  0x20   :  { %1874 = vmatpush.bf16.msra.mxu2 %v3344_v21  ;;  %v3103_v37 = vld [vmem:[#allocation5 + $0x240] sm:$0xf]  ;;  %v3512_v38 = vor.u32 %v4334_v32, %v3511_v31  ;;  %v4232_v39 = vld [vmem:[#allocation5 + $0x254] sm:$0xf0]  ;;  %v2912_v44 = vor.u32 %v4184_v36, %v2911_v35  ;;  %v2887_v47 = vld [vmem:[#allocation5 + $0x90] sm:$0xf] }
  0x21   :  { %1887 = vmatpush.bf16.msra.mxu3 %v3536_v25  ;;  %v3295_v40 = vld [vmem:[#allocation5 + $0x3c0] sm:$0xf]  ;;  %v4280_v41 = vld [vmem:[#allocation5 + $0x3d4] sm:$0xf0]  ;;  %v3104_v45 = vor.u32 %v4232_v39, %v3103_v37  ;;  %v4178_v48 = vld [vmem:[#allocation5 + $0xa4] sm:$0xf0] }
  0x22   :  { %v3487_v42 = vld [vmem:[#allocation5 + $0x540] sm:$0xf]  ;;  %v4328_v43 = vld [vmem:[#allocation5 + $0x554] sm:$0xf0]  ;;  %1849 = vmatpush.bf16.msra.mxu0 %v2936_v29  ;;  %v3296_v46 = vor.u32 %v4280_v41, %v3295_v40  ;;  %v3079_v49 = vld [vmem:[#allocation5 + $0x210] sm:$0xf]  ;;  %v2888_v56 = vor.u32 %v4178_v48, %v2887_v47 }
  0x23   :  { %1862 = vmatpush.bf16.msra.mxu1 %v3128_v33  ;;  %v3488_v50 = vor.u32 %v4328_v43, %v3487_v42  ;;  %v4226_v51 = vld [vmem:[#allocation5 + $0x224] sm:$0xf0]  ;;  %v3271_v52 = vld [vmem:[#allocation5 + $0x390] sm:$0xf]  ;;  %v2863_v59 = vld [vmem:[#allocation5 + $0x60] sm:$0xf] }
  0x24   :  { %1875 = vmatpush.bf16.msra.mxu2 %v3320_v34  ;;  %v4274_v53 = vld [vmem:[#allocation5 + $0x3a4] sm:$0xf0]  ;;  %v3463_v54 = vld [vmem:[#allocation5 + $0x510] sm:$0xf]  ;;  %v3080_v57 = vor.u32 %v4226_v51, %v3079_v49  ;;  %v4172_v60 = vld [vmem:[#allocation5 + $0x74] sm:$0xf0] }
  0x25   :  { %1888 = vmatpush.bf16.msra.mxu3 %v3512_v38  ;;  %v4322_v55 = vld [vmem:[#allocation5 + $0x524] sm:$0xf0]  ;;  %v3272_v58 = vor.u32 %v4274_v53, %v3271_v52  ;;  %v3055_v61 = vld [vmem:[#allocation5 + $0x1e0] sm:$0xf]  ;;  %v4220_v63 = vld [vmem:[#allocation5 + $0x1f4] sm:$0xf0]  ;;  %v2864_v4 = vor.u32 %v4172_v60, %v2863_v59 }
  0x26   :  { %1850 = vmatpush.bf16.msra.mxu0 %v2912_v44  ;;  %v3464_v62 = vor.u32 %v4322_v55, %v3463_v54  ;;  %v3247_v0 = vld [vmem:[#allocation5 + $0x360] sm:$0xf]  ;;  %v4268_v1 = vld [vmem:[#allocation5 + $0x374] sm:$0xf0]  ;;  %v3056_v5 = vor.u32 %v4220_v63, %v3055_v61  ;;  %v2839_v7 = vld [vmem:[#allocation5 + $0x30] sm:$0xf] }
  0x27   :  { %1863 = vmatpush.bf16.msra.mxu1 %v3104_v45  ;;  %v3439_v2 = vld [vmem:[#allocation5 + $0x4e0] sm:$0xf]  ;;  %v4316_v3 = vld [vmem:[#allocation5 + $0x4f4] sm:$0xf0]  ;;  %v3248_v6 = vor.u32 %v4268_v1, %v3247_v0  ;;  %v4166_v8 = vld [vmem:[#allocation5 + $0x44] sm:$0xf0] }
  0x28   :  { %1876 = vmatpush.bf16.msra.mxu2 %v3296_v46  ;;  %v3031_v9 = vld [vmem:[#allocation5 + $0x1b0] sm:$0xf]  ;;  %v3440_v10 = vor.u32 %v4316_v3, %v3439_v2  ;;  %v4214_v11 = vld [vmem:[#allocation5 + $0x1c4] sm:$0xf0]  ;;  %v2840_v16 = vor.u32 %v4166_v8, %v2839_v7  ;;  %v2815_v17 = vld [vmem:[#allocation5] sm:$0xf] }
  0x29   :  { %1889 = vmatpush.bf16.msra.mxu3 %v3488_v50  ;;  %v3223_v12 = vld [vmem:[#allocation5 + $0x330] sm:$0xf]  ;;  %v4262_v13 = vld [vmem:[#allocation5 + $0x344] sm:$0xf0]  ;;  %v4160_v18 = vld [vmem:[#allocation5 + $0x14] sm:$0xf0]  ;;  %v3032_v19 = vor.u32 %v4214_v11, %v3031_v9 }
  0x2a   :  { %1851 = vmatpush.bf16.msra.mxu0 %v2888_v56  ;;  %v3415_v14 = vld [vmem:[#allocation5 + $0x4b0] sm:$0xf]  ;;  %v4310_v15 = vld [vmem:[#allocation5 + $0x4c4] sm:$0xf0]  ;;  %v3224_v20 = vor.u32 %v4262_v13, %v3223_v12  ;;  %v3007_v21 = vld [vmem:[#allocation5 + $0x180] sm:$0xf]  ;;  %v2816_v31 = vor.u32 %v4160_v18, %v2815_v17 }
  0x2b   :  { %1864 = vmatpush.bf16.msra.mxu1 %v3080_v57  ;;  %v4208_v22 = vld [vmem:[#allocation5 + $0x194] sm:$0xf0]  ;;  %v3199_v23 = vld [vmem:[#allocation5 + $0x300] sm:$0xf]  ;;  %v3416_v24 = vor.u32 %v4310_v15, %v3415_v14  ;;  %v3751_v28 = vld [vmem:[#allocation5 + $0x750] sm:$0xf] }
  0x2c   :  { %1877 = vmatpush.bf16.msra.mxu2 %v3272_v58  ;;  %v4256_v25 = vld [vmem:[#allocation5 + $0x314] sm:$0xf0]  ;;  %v3391_v26 = vld [vmem:[#allocation5 + $0x480] sm:$0xf]  ;;  %v4394_v29 = vld [vmem:[#allocation5 + $0x764] sm:$0xf0]  ;;  %v3008_v35 = vor.u32 %v4208_v22, %v3007_v21 }
  0x2d   :  { %1890 = vmatpush.bf16.msra.mxu3 %v3464_v62  ;;  %v4304_v27 = vld [vmem:[#allocation5 + $0x494] sm:$0xf0]  ;;  %v3943_v30 = vld [vmem:[#allocation5 + $0x8d0] sm:$0xf]  ;;  %v4442_v32 = vld [vmem:[#allocation5 + $0x8e4] sm:$0xf0]  ;;  %v3200_v36 = vor.u32 %v4256_v25, %v3199_v23  ;;  %v3752_v40 = vor.u32 %v4394_v29, %v3751_v28 }
  0x2e   :  { %1852 = vmatpush.bf16.msra.mxu0 %v2864_v4  ;;  %v4199_v33 = vld [vmem:[#allocation5 + $0x154] sm:$0xf]  ;;  %v2985_v34 = vld [vmem:[#allocation5 + $0x168] sm:$0xf0]  ;;  %v3392_v39 = vor.u32 %v4304_v27, %v3391_v26  ;;  %v3944_v41 = vor.u32 %v4442_v32, %v3943_v30  ;;  %v3727_v43 = vld [vmem:[#allocation5 + $0x720] sm:$0xf] }
  0x2f   :  { %1865 = vmatpush.bf16.msra.mxu1 %v3056_v5  ;;  %v4247_v37 = vld [vmem:[#allocation5 + $0x2d4] sm:$0xf]  ;;  %v3177_v38 = vld [vmem:[#allocation5 + $0x2e8] sm:$0xf0]  ;;  %v2988_v42 = vor.u32 %v4199_v33, %v2985_v34  ;;  %v4388_v44 = vld [vmem:[#allocation5 + $0x734] sm:$0xf0] }
  0x30   :  { %1878 = vmatpush.bf16.msra.mxu2 %v3248_v6  ;;  %v3919_v45 = vld [vmem:[#allocation5 + $0x8a0] sm:$0xf]  ;;  %v3180_v46 = vor.u32 %v4247_v37, %v3177_v38  ;;  %v4436_v47 = vld [vmem:[#allocation5 + $0x8b4] sm:$0xf0]  ;;  %v4193_v48 = vld [vmem:[#allocation5 + $0x124] sm:$0xf]  ;;  %v3728_v52 = vor.u32 %v4388_v44, %v3727_v43 }
  0x31   :  { %1891 = vmatpush.bf16.msra.mxu3 %v3440_v10  ;;  %v2961_v49 = vld [vmem:[#allocation5 + $0x138] sm:$0xf0]  ;;  %v4241_v50 = vld [vmem:[#allocation5 + $0x2a4] sm:$0xf]  ;;  %v3703_v53 = vld [vmem:[#allocation5 + $0x6f0] sm:$0xf]  ;;  %v3920_v54 = vor.u32 %v4436_v47, %v3919_v45 }
  0x32   :  { %1853 = vmatpush.bf16.msra.mxu0 %v2840_v16  ;;  %v3153_v51 = vld [vmem:[#allocation5 + $0x2b8] sm:$0xf0]  ;;  %v2964_v55 = vor.u32 %v4193_v48, %v2961_v49  ;;  %v4382_v56 = vld [vmem:[#allocation5 + $0x704] sm:$0xf0]  ;;  %v3895_v57 = vld [vmem:[#allocation5 + $0x870] sm:$0xf] }
  0x33   :  { %1866 = vmatpush.bf16.msra.mxu1 %v3032_v19  ;;  %v4430_v58 = vld [vmem:[#allocation5 + $0x884] sm:$0xf0]  ;;  %v3156_v59 = vor.u32 %v4241_v50, %v3153_v51  ;;  %v4187_v60 = vld [vmem:[#allocation5 + $0xf4] sm:$0xf]  ;;  %v2937_v61 = vld [vmem:[#allocation5 + $0x108] sm:$0xf0]  ;;  %v3704_v0 = vor.u32 %v4382_v56, %v3703_v53 }
  0x34   :  { %1879 = vmatpush.bf16.msra.mxu2 %v3224_v20  ;;  %v4235_v62 = vld [vmem:[#allocation5 + $0x274] sm:$0xf]  ;;  %v3129_v63 = vld [vmem:[#allocation5 + $0x288] sm:$0xf0]  ;;  %v3896_v1 = vor.u32 %v4430_v58, %v3895_v57  ;;  %v3679_v2 = vld [vmem:[#allocation5 + $0x6c0] sm:$0xf]  ;;  %v2940_v5 = vor.u32 %v4187_v60, %v2937_v61 }
  0x35   :  { %1892 = vmatpush.bf16.msra.mxu3 %v3416_v24  ;;  %v95_v3 = vld [vmem:[#allocation2 + $0x10] sm:$0xff]  ;;  %v93_v4 = vld [vmem:[#allocation2] sm:$0xff]  ;;  %v4376_v6 = vld [vmem:[#allocation5 + $0x6d4] sm:$0xf0]  ;;  %v3132_v11 = vor.u32 %v4235_v62, %v3129_v63  ;;  %s4678_s2 = smov [#allocation11]   ;;  %s2801_s21 = sshll.u32 %s4814_s5, 4  ;;  %s2802_s21 = int_to_ptr.hbm [resolvable:$true] %s2801_s21 }
  0x36   :  { %1854 = vmatpush.bf16.msra.mxu0 %v2816_v31  ;;  %v3871_v7 = vld [vmem:[#allocation5 + $0x840] sm:$0xf]  ;;  %v4724_v8 = vpack.c.bf16 %v95_v3, %v95_v3  ;;  %v4726_v9 = vpack.c.bf16 %v93_v4, %v93_v4  ;;  %v96_v10 = vld [vmem:[#allocation2 + $0x18] sm:$0xff]  ;;  %v4424_v12 = vld [vmem:[#allocation5 + $0x854] sm:$0xf0]  ;;  %v3680_v18 = vor.u32 %v4376_v6, %v3679_v2  ;;  %s2799_s4 = sshll.u32 %s4678_s2, 4  ;;  %s2800_s4 = int_to_ptr.vmem [resolvable:$true] %s2799_s4 }
  0x37   :  { %1867 = vmatpush.bf16.msra.mxu1 %v3008_v35  ;;  %v4181_v13 = vld [vmem:[#allocation5 + $0xc4] sm:$0xf]  ;;  %v2913_v14 = vld [vmem:[#allocation5 + $0xd8] sm:$0xf0]  ;;  %v4728_v15 = vpack.c.bf16 %v96_v10, %v96_v10  ;;  %v3872_v20 = vor.u32 %v4424_v12, %v3871_v7  ;;  %v3655_v22 = vld [vmem:[#allocation5 + $0x690] sm:$0xf] }
  0x38   :  { %1880 = vmatpush.bf16.msra.mxu2 %v3200_v36  ;;  %v4229_v16 = vld [vmem:[#allocation5 + $0x244] sm:$0xf]  ;;  %v3105_v17 = vld [vmem:[#allocation5 + $0x258] sm:$0xf0]  ;;  %v2916_v21 = vor.u32 %v4181_v13, %v2913_v14  ;;  %v4370_v23 = vld [vmem:[#allocation5 + $0x6a4] sm:$0xf0] }
  0x39   :  { %1893 = vmatpush.bf16.msra.mxu3 %v3392_v39  ;;  %1855 = vmatmul.bf16.vlgmr.msra.gmra.mxu0 %v4726_v9  ;;  %v94_v19 = vld [vmem:[#allocation2 + $0x8] sm:$0xff]  ;;  %v3847_v24 = vld [vmem:[#allocation5 + $0x810] sm:$0xf]  ;;  %v3108_v26 = vor.u32 %v4229_v16, %v3105_v17  ;;  %v4418_v27 = vld [vmem:[#allocation5 + $0x824] sm:$0xf0]  ;;  %v3656_v32 = vor.u32 %v4370_v23, %v3655_v22 }
  0x3a   :  { %1899 = vmatpush.bf16.msrb.mxu0 %v3752_v40  ;;  %v4733_v25 = vpack.c.bf16 %v94_v19, %v94_v19  ;;  %v4175_v28 = vld [vmem:[#allocation5 + $0x94] sm:$0xf]  ;;  %v2889_v29 = vld [vmem:[#allocation5 + $0xa8] sm:$0xf0]  ;;  %v3848_v33 = vor.u32 %v4418_v27, %v3847_v24  ;;  %v3631_v35 = vld [vmem:[#allocation5 + $0x660] sm:$0xf] }
  0x3b   :  { %1912 = vmatpush.bf16.msrb.mxu1 %v3944_v41  ;;  %1881 = vmatmul.bf16.vlgmr.msra.gmra.mxu2 %v4724_v8  ;;  %v4223_v30 = vld [vmem:[#allocation5 + $0x214] sm:$0xf]  ;;  %v3081_v31 = vld [vmem:[#allocation5 + $0x228] sm:$0xf0]  ;;  %v2892_v34 = vor.u32 %v4175_v28, %v2889_v29  ;;  %v4364_v36 = vld [vmem:[#allocation5 + $0x674] sm:$0xf0] }
  0x3c   :  { %1925 = vmatpush.bf16.msrb.mxu2 %v2988_v42  ;;  %1894 = vmatmul.bf16.vlgmr.msra.gmra.mxu3 %v4728_v15  ;;  %v3823_v37 = vld [vmem:[#allocation5 + $0x7e0] sm:$0xf]  ;;  %v3084_v38 = vor.u32 %v4223_v30, %v3081_v31  ;;  %v4412_v39 = vld [vmem:[#allocation5 + $0x7f4] sm:$0xf0]  ;;  %v4169_v40 = vld [vmem:[#allocation5 + $0x64] sm:$0xf]  ;;  %v3632_v44 = vor.u32 %v4364_v36, %v3631_v35 }
  0x3d   :  { %1938 = vmatpush.bf16.msrb.mxu3 %v3180_v46  ;;  %1868 = vmatmul.bf16.vlgmr.msra.gmra.mxu1 %v4733_v25  ;;  %v2865_v41 = vld [vmem:[#allocation5 + $0x78] sm:$0xf0]  ;;  %v4217_v42 = vld [vmem:[#allocation5 + $0x1e4] sm:$0xf]  ;;  %v3824_v45 = vor.u32 %v4412_v39, %v3823_v37  ;;  %v3607_v47 = vld [vmem:[#allocation5 + $0x630] sm:$0xf] }
  0x3e   :  { %1900 = vmatpush.bf16.msrb.mxu0 %v3728_v52  ;;  %v3057_v43 = vld [vmem:[#allocation5 + $0x1f8] sm:$0xf0]  ;;  %v2868_v46 = vor.u32 %v4169_v40, %v2865_v41  ;;  %v4358_v48 = vld [vmem:[#allocation5 + $0x644] sm:$0xf0]  ;;  %v3799_v49 = vld [vmem:[#allocation5 + $0x7b0] sm:$0xf] }
  0x3f   :  { %1913 = vmatpush.bf16.msrb.mxu1 %v3920_v54  ;;  %v3060_v50 = vor.u32 %v4217_v42, %v3057_v43  ;;  %v4406_v51 = vld [vmem:[#allocation5 + $0x7c4] sm:$0xf0]  ;;  %v4163_v52 = vld [vmem:[#allocation5 + $0x34] sm:$0xf]  ;;  %v2841_v53 = vld [vmem:[#allocation5 + $0x48] sm:$0xf0]  ;;  %v3608_v56 = vor.u32 %v4358_v48, %v3607_v47 }
  0x40   :  { %1926 = vmatpush.bf16.msrb.mxu2 %v2964_v55  ;;  %v4211_v54 = vld [vmem:[#allocation5 + $0x1b4] sm:$0xf]  ;;  %v3033_v55 = vld [vmem:[#allocation5 + $0x1c8] sm:$0xf0]  ;;  %v3583_v57 = vld [vmem:[#allocation5 + $0x600] sm:$0xf]  ;;  %v2844_v60 = vor.u32 %v4163_v52, %v2841_v53 }
  0x41   :  { %1939 = vmatpush.bf16.msrb.mxu3 %v3156_v59  ;;  %v4352_v58 = vld [vmem:[#allocation5 + $0x614] sm:$0xf0]  ;;  %v3800_v59 = vor.u32 %v4406_v51, %v3799_v49  ;;  %v3775_v61 = vld [vmem:[#allocation5 + $0x780] sm:$0xf]  ;;  %v4157_v63 = vld [vmem:[#allocation5 + $0x4] sm:$0xf] }
  0x42   :  { %1901 = vmatpush.bf16.msrb.mxu0 %v3704_v0  ;;  %v4400_v62 = vld [vmem:[#allocation5 + $0x794] sm:$0xf0]  ;;  %v3036_v0 = vor.u32 %v4211_v54, %v3033_v55  ;;  %v4205_v2 = vld [vmem:[#allocation5 + $0x184] sm:$0xf]  ;;  %v3009_v3 = vld [vmem:[#allocation5 + $0x198] sm:$0xf0]  ;;  %v3584_v7 = vor.u32 %v4352_v58, %v3583_v57 }
  0x43   :  { %1914 = vmatpush.bf16.msrb.mxu1 %v3896_v1  ;;  %v2817_v1 = vld [vmem:[#allocation5 + $0x18] sm:$0xf0]  ;;  %v4295_v4 = vld [vmem:[#allocation5 + $0x454] sm:$0xf]  ;;  %v3561_v10 = vld [vmem:[#allocation5 + $0x5e8] sm:$0xf0]  ;;  %v3776_v13 = vor.u32 %v4400_v62, %v3775_v61  ;;  %v3012_v19 = vor.u32 %v4205_v2, %v3009_v3 }
  0x44   :  { %1927 = vmatpush.bf16.msrb.mxu2 %v2940_v5  ;;  %v3369_v5 = vld [vmem:[#allocation5 + $0x468] sm:$0xf0]  ;;  %v4343_v6 = vld [vmem:[#allocation5 + $0x5d4] sm:$0xf]  ;;  %v2820_v14 = vor.u32 %v4157_v63, %v2817_v1  ;;  %v4289_v24 = vld [vmem:[#allocation5 + $0x424] sm:$0xf] }
  0x45   :  { %1940 = vmatpush.bf16.msrb.mxu3 %v3132_v11  ;;  %v4391_v11 = vld [vmem:[#allocation5 + $0x754] sm:$0xf]  ;;  %v3753_v12 = vld [vmem:[#allocation5 + $0x768] sm:$0xf0]  ;;  %v3564_v22 = vor.u32 %v4343_v6, %v3561_v10  ;;  %v4337_v27 = vld [vmem:[#allocation5 + $0x5a4] sm:$0xf] }
  0x46   :  { %1902 = vmatpush.bf16.msrb.mxu0 %v3680_v18  ;;  %v4439_v16 = vld [vmem:[#allocation5 + $0x8d4] sm:$0xf]  ;;  %v3945_v17 = vld [vmem:[#allocation5 + $0x8e8] sm:$0xf0]  ;;  %v3756_v23 = vor.u32 %v4391_v11, %v3753_v12  ;;  %v3537_v29 = vld [vmem:[#allocation5 + $0x5b8] sm:$0xf0] }
  0x47   :  { %1915 = vmatpush.bf16.msrb.mxu1 %v3872_v20  ;;  %v97_v18 = vld [vmem:[#allocation2 + $0x20] sm:$0xff]  ;;  %v3372_v20 = vor.u32 %v4295_v4, %v3369_v5  ;;  %v3948_v28 = vor.u32 %v4439_v16, %v3945_v17  ;;  %v4385_v30 = vld [vmem:[#allocation5 + $0x724] sm:$0xf]  ;;  %v3729_v31 = vld [vmem:[#allocation5 + $0x738] sm:$0xf0]  ;;  %v3540_v37 = vor.u32 %v4337_v27, %v3537_v29 }
  0x48   :  { %1928 = vmatpush.bf16.msrb.mxu2 %v2916_v21  ;;  %v98_v21 = vld [vmem:[#allocation2 + $0x28] sm:$0xff]  ;;  %v4283_v39 = vld [vmem:[#allocation5 + $0x3f4] sm:$0xf]  ;;  %v3321_v40 = vld [vmem:[#allocation5 + $0x408] sm:$0xf0] }
  0x49   :  { %1941 = vmatpush.bf16.msrb.mxu3 %v3108_v26  ;;  %v3345_v26 = vld [vmem:[#allocation5 + $0x438] sm:$0xf0]  ;;  %v4738_v35 = vpack.c.bf16 %v98_v21, %v98_v21  ;;  %v4331_v41 = vld [vmem:[#allocation5 + $0x574] sm:$0xf]  ;;  %v3513_v43 = vld [vmem:[#allocation5 + $0x588] sm:$0xf0]  ;;  %v3324_v48 = vor.u32 %v4283_v39, %v3321_v40 }
  0x4a   :  { %1903 = vmatpush.bf16.msrb.mxu0 %v3656_v32  ;;  %v4736_v32 = vpack.c.bf16 %v97_v18, %v97_v18  ;;  %v3348_v36 = vor.u32 %v4289_v24, %v3345_v26  ;;  %v3897_v47 = vld [vmem:[#allocation5 + $0x888] sm:$0xf0]  ;;  %v3516_v49 = vor.u32 %v4331_v41, %v3513_v43  ;;  %v4277_v51 = vld [vmem:[#allocation5 + $0x3c4] sm:$0xf]  ;;  %v3297_v52 = vld [vmem:[#allocation5 + $0x3d8] sm:$0xf0] }
  0x4b   :  { %1916 = vmatpush.bf16.msrb.mxu1 %v3848_v33  ;;  %v4433_v33 = vld [vmem:[#allocation5 + $0x8a4] sm:$0xf]  ;;  %v3489_v55 = vld [vmem:[#allocation5 + $0x558] sm:$0xf0]  ;;  %v4271_v63 = vld [vmem:[#allocation5 + $0x394] sm:$0xf] }
  0x4c   :  { %1929 = vmatpush.bf16.msrb.mxu2 %v2892_v34  ;;  %v3921_v34 = vld [vmem:[#allocation5 + $0x8b8] sm:$0xf0]  ;;  %v4325_v53 = vld [vmem:[#allocation5 + $0x544] sm:$0xf]  ;;  %v4319_v1 = vld [vmem:[#allocation5 + $0x514] sm:$0xf] }
  0x4d   :  { %1942 = vmatpush.bf16.msrb.mxu3 %v3084_v38  ;;  %v3732_v38 = vor.u32 %v4385_v30, %v3729_v31  ;;  %v3924_v42 = vor.u32 %v4433_v33, %v3921_v34  ;;  %v3681_v57 = vld [vmem:[#allocation5 + $0x6d8] sm:$0xf0]  ;;  %v4421_v58 = vld [vmem:[#allocation5 + $0x844] sm:$0xf]  ;;  %v3492_v61 = vor.u32 %v4325_v53, %v3489_v55  ;;  %v3465_v3 = vld [vmem:[#allocation5 + $0x528] sm:$0xf0] }
  0x4e   :  { %1904 = vmatpush.bf16.msrb.mxu0 %v3632_v44  ;;  %v4379_v44 = vld [vmem:[#allocation5 + $0x6f4] sm:$0xf]  ;;  %v3657_v5 = vld [vmem:[#allocation5 + $0x6a8] sm:$0xf0]  ;;  %v3468_v11 = vor.u32 %v4319_v1, %v3465_v3  ;;  %v4313_v16 = vld [vmem:[#allocation5 + $0x4e4] sm:$0xf] }
  0x4f   :  { %1917 = vmatpush.bf16.msrb.mxu1 %v3824_v45  ;;  %v3705_v45 = vld [vmem:[#allocation5 + $0x708] sm:$0xf0]  ;;  %v4367_v4 = vld [vmem:[#allocation5 + $0x694] sm:$0xf]  ;;  %v3441_v18 = vld [vmem:[#allocation5 + $0x4f8] sm:$0xf0] }
  0x50   :  { %1930 = vmatpush.bf16.msrb.mxu2 %v2868_v46  ;;  %v4427_v46 = vld [vmem:[#allocation5 + $0x874] sm:$0xf]  ;;  %v3660_v12 = vor.u32 %v4367_v4, %v3657_v5  ;;  %v4409_v21 = vld [vmem:[#allocation5 + $0x7e4] sm:$0xf]  ;;  %v3444_v24 = vor.u32 %v4313_v16, %v3441_v18  ;;  %v3417_v31 = vld [vmem:[#allocation5 + $0x4c8] sm:$0xf0] }
  0x51   :  { %1943 = vmatpush.bf16.msrb.mxu3 %v3060_v50  ;;  %v3708_v50 = vor.u32 %v4379_v44, %v3705_v45  ;;  %v3900_v54 = vor.u32 %v4427_v46, %v3897_v47  ;;  %v4415_v6 = vld [vmem:[#allocation5 + $0x814] sm:$0xf]  ;;  %v3609_v34 = vld [vmem:[#allocation5 + $0x648] sm:$0xf0]  ;;  %v4253_v39 = vld [vmem:[#allocation5 + $0x304] sm:$0xf] }
  0x52   :  { %1905 = vmatpush.bf16.msrb.mxu0 %v3608_v56  ;;  %v4373_v56 = vld [vmem:[#allocation5 + $0x6c4] sm:$0xf]  ;;  %v4259_v27 = vld [vmem:[#allocation5 + $0x334] sm:$0xf]  ;;  %v3201_v40 = vld [vmem:[#allocation5 + $0x318] sm:$0xf0] }
  0x53   :  { %1918 = vmatpush.bf16.msrb.mxu1 %v3800_v59  ;;  %v3873_v59 = vld [vmem:[#allocation5 + $0x858] sm:$0xf0]  ;;  %v3684_v62 = vor.u32 %v4373_v56, %v3681_v57  ;;  %v4307_v29 = vld [vmem:[#allocation5 + $0x4b4] sm:$0xf]  ;;  %v4301_v43 = vld [vmem:[#allocation5 + $0x484] sm:$0xf]  ;;  %v3204_v53 = vor.u32 %v4253_v39, %v3201_v40 }
  0x54   :  { %1931 = vmatpush.bf16.msrb.mxu2 %v2844_v60  ;;  %v3300_v60 = vor.u32 %v4277_v51, %v3297_v52  ;;  %v3876_v2 = vor.u32 %v4421_v58, %v3873_v59  ;;  %v4355_v33 = vld [vmem:[#allocation5 + $0x634] sm:$0xf]  ;;  %v3420_v41 = vor.u32 %v4307_v29, %v3417_v31  ;;  %v3393_v44 = vld [vmem:[#allocation5 + $0x498] sm:$0xf0]  ;;  %v4349_v45 = vld [vmem:[#allocation5 + $0x604] sm:$0xf] }
  0x55   :  { %1944 = vmatpush.bf16.msrb.mxu3 %v3036_v0  ;;  %v3273_v0 = vld [vmem:[#allocation5 + $0x3a8] sm:$0xf0]  ;;  %v3585_v47 = vld [vmem:[#allocation5 + $0x618] sm:$0xf0]  ;;  %v4203_v51 = vld [vmem:[#allocation5 + $0x16c] sm:$0xf0]  ;;  %v3396_v57 = vor.u32 %v4301_v43, %v3393_v44 }
  0x56   :  { %1906 = vmatpush.bf16.msrb.mxu0 %v3584_v7  ;;  %v3849_v7 = vld [vmem:[#allocation5 + $0x828] sm:$0xf0]  ;;  %v3276_v10 = vor.u32 %v4271_v63, %v3273_v0  ;;  %v3183_v52 = vld [vmem:[#allocation5 + $0x2d8] sm:$0xf]  ;;  %v4299_v56 = vld [vmem:[#allocation5 + $0x46c] sm:$0xf0]  ;;  %v3588_v58 = vor.u32 %v4349_v45, %v3585_v47 }
  0x57   :  { %1919 = vmatpush.bf16.msrb.mxu1 %v3776_v13  ;;  %v4265_v13 = vld [vmem:[#allocation5 + $0x364] sm:$0xf]  ;;  %v3852_v17 = vor.u32 %v4415_v6, %v3849_v7  ;;  %v3375_v55 = vld [vmem:[#allocation5 + $0x458] sm:$0xf]  ;;  %v2967_v1 = vld [vmem:[#allocation5 + $0x128] sm:$0xf] }
  0x58   :  { %1932 = vmatpush.bf16.msrb.mxu2 %v2820_v14  ;;  %v3249_v14 = vld [vmem:[#allocation5 + $0x378] sm:$0xf0]  ;;  %v3567_v59 = vld [vmem:[#allocation5 + $0x5d8] sm:$0xf]  ;;  %v3376_v0 = vor.u32 %v4299_v56, %v3375_v55  ;;  %v3159_v3 = vld [vmem:[#allocation5 + $0x2a8] sm:$0xf] }
  0x59   :  { %1945 = vmatpush.bf16.msrb.mxu3 %v3012_v19  ;;  %1907 = vmatmul.bf16.vlgmr.msrb.gmra.mxu0 %v4736_v32  ;;  %v4361_v19 = vld [vmem:[#allocation5 + $0x664] sm:$0xf]  ;;  %v4245_v5 = vld [vmem:[#allocation5 + $0x2bc] sm:$0xf0]  ;;  %v3351_v6 = vld [vmem:[#allocation5 + $0x428] sm:$0xf] }
  0x5a   :  { %1951 = vmatpush.bf16.msra.mxu0 %v3372_v20  ;;  %1920 = vmatmul.bf16.vlgmr.msrb.gmra.mxu1 %v4738_v35  ;;  %v3633_v20 = vld [vmem:[#allocation5 + $0x678] sm:$0xf0]  ;;  %v4293_v7 = vld [vmem:[#allocation5 + $0x43c] sm:$0xf0]  ;;  %v2943_v16 = vld [vmem:[#allocation5 + $0xf8] sm:$0xf] }
  0x5b   :  { %1964 = vmatpush.bf16.msra.mxu1 %v3564_v22  ;;  %1933 = vmatmul.bf16.vlgmr.msrb.gmra.mxu2 %v4726_v9  ;;  %v3825_v22 = vld [vmem:[#allocation5 + $0x7f8] sm:$0xf0]  ;;  %v3636_v26 = vor.u32 %v4361_v19, %v3633_v20  ;;  %v3135_v18 = vld [vmem:[#allocation5 + $0x278] sm:$0xf]  ;;  %v4239_v20 = vld [vmem:[#allocation5 + $0x28c] sm:$0xf0] }
  0x5c   :  { %1977 = vmatpush.bf16.msra.mxu2 %v3756_v23  ;;  %1946 = vmatmul.bf16.vlgmr.msrb.gmra.mxu3 %v4733_v25  ;;  %v3252_v23 = vor.u32 %v4265_v13, %v3249_v14  ;;  %v3828_v30 = vor.u32 %v4409_v21, %v3825_v22  ;;  %v3160_v13 = vor.u32 %v4245_v5, %v3159_v3  ;;  %v3327_v21 = vld [vmem:[#allocation5 + $0x3f8] sm:$0xf]  ;;  %v4287_v22 = vld [vmem:[#allocation5 + $0x40c] sm:$0xf0]  ;;  %v2919_v29 = vld [vmem:[#allocation5 + $0xc8] sm:$0xf] }
  0x5d   :  { %1990 = vmatpush.bf16.msra.mxu3 %v3948_v28  ;;  %v3225_v28 = vld [vmem:[#allocation5 + $0x348] sm:$0xf0]  ;;  %v3352_v14 = vor.u32 %v4293_v7, %v3351_v6  ;;  %v3111_v31 = vld [vmem:[#allocation5 + $0x248] sm:$0xf]  ;;  %v4329_v39 = vld [vmem:[#allocation5 + $0x55c] sm:$0xf0] }
  0x5e   :  { %1952 = vmatpush.bf16.msra.mxu0 %v3348_v36  ;;  %v4403_v36 = vld [vmem:[#allocation5 + $0x7b4] sm:$0xf]  ;;  %v2895_v43 = vld [vmem:[#allocation5 + $0x98] sm:$0xf]  ;;  %v4179_v44 = vld [vmem:[#allocation5 + $0xac] sm:$0xf0] }
  0x5f   :  { %1965 = vmatpush.bf16.msra.mxu1 %v3540_v37  ;;  %v3801_v37 = vld [vmem:[#allocation5 + $0x7c8] sm:$0xf0]  ;;  %v3087_v45 = vld [vmem:[#allocation5 + $0x218] sm:$0xf]  ;;  %v4227_v47 = vld [vmem:[#allocation5 + $0x22c] sm:$0xf0] }
  0x60   :  { %1978 = vmatpush.bf16.msra.mxu2 %v3732_v38  ;;  %v3228_v38 = vor.u32 %v4259_v27, %v3225_v28  ;;  %v3804_v46 = vor.u32 %v4403_v36, %v3801_v37  ;;  %v3136_v27 = vor.u32 %v4239_v20, %v3135_v18  ;;  %v3328_v28 = vor.u32 %v4287_v22, %v3327_v21  ;;  %v3303_v36 = vld [vmem:[#allocation5 + $0x3c8] sm:$0xf]  ;;  %v4281_v37 = vld [vmem:[#allocation5 + $0x3dc] sm:$0xf0]  ;;  %v2847_v3 = vld [vmem:[#allocation5 + $0x38] sm:$0xf] }
  0x61   :  { %1991 = vmatpush.bf16.msra.mxu3 %v3924_v42  ;;  %v3612_v42 = vor.u32 %v4355_v33, %v3609_v34  ;;  %v4233_v34 = vld [vmem:[#allocation5 + $0x25c] sm:$0xf0]  ;;  %v2871_v55 = vld [vmem:[#allocation5 + $0x68] sm:$0xf]  ;;  %v3039_v5 = vld [vmem:[#allocation5 + $0x1b8] sm:$0xf] }
  0x62   :  { %1953 = vmatpush.bf16.msra.mxu0 %v3324_v48  ;;  %v4397_v48 = vld [vmem:[#allocation5 + $0x784] sm:$0xf]  ;;  %v4173_v56 = vld [vmem:[#allocation5 + $0x7c] sm:$0xf0]  ;;  %v4215_v7 = vld [vmem:[#allocation5 + $0x1cc] sm:$0xf0] }
  0x63   :  { %1966 = vmatpush.bf16.msra.mxu1 %v3516_v49  ;;  %v3777_v49 = vld [vmem:[#allocation5 + $0x798] sm:$0xf0]  ;;  %v3040_v18 = vor.u32 %v4215_v7, %v3039_v5  ;;  %v3015_v20 = vld [vmem:[#allocation5 + $0x188] sm:$0xf]  ;;  %v4209_v21 = vld [vmem:[#allocation5 + $0x19c] sm:$0xf0] }
  0x64   :  { %1979 = vmatpush.bf16.msra.mxu2 %v3708_v50  ;;  %v2991_v50 = vld [vmem:[#allocation5 + $0x158] sm:$0xf]  ;;  %v3207_v22 = vld [vmem:[#allocation5 + $0x308] sm:$0xf] }
  0x65   :  { %1992 = vmatpush.bf16.msra.mxu3 %v3900_v54  ;;  %v4251_v54 = vld [vmem:[#allocation5 + $0x2ec] sm:$0xf0]  ;;  %v3687_v5 = vld [vmem:[#allocation5 + $0x6c8] sm:$0xf] }
  0x66   :  { %1954 = vmatpush.bf16.msra.mxu0 %v3300_v60  ;;  %v4347_v60 = vld [vmem:[#allocation5 + $0x5ec] sm:$0xf0]  ;;  %v3184_v63 = vor.u32 %v4251_v54, %v3183_v52  ;;  %v2896_v52 = vor.u32 %v4179_v44, %v2895_v43  ;;  %v3879_v7 = vld [vmem:[#allocation5 + $0x848] sm:$0xf] }
  0x67   :  { %1967 = vmatpush.bf16.msra.mxu1 %v3492_v61  ;;  %v3780_v61 = vor.u32 %v4397_v48, %v3777_v49  ;;  %v3568_v4 = vor.u32 %v4347_v60, %v3567_v59  ;;  %v3279_v48 = vld [vmem:[#allocation5 + $0x398] sm:$0xf]  ;;  %v4275_v49 = vld [vmem:[#allocation5 + $0x3ac] sm:$0xf0]  ;;  %v4221_v59 = vld [vmem:[#allocation5 + $0x1fc] sm:$0xf0] }
  0x68   :  { %1980 = vmatpush.bf16.msra.mxu2 %v3684_v62  ;;  %v2992_v62 = vor.u32 %v4203_v51, %v2991_v50  ;;  %v3471_v50 = vld [vmem:[#allocation5 + $0x518] sm:$0xf]  ;;  %v4323_v51 = vld [vmem:[#allocation5 + $0x52c] sm:$0xf0]  ;;  %v3280_v54 = vor.u32 %v4275_v49, %v3279_v48  ;;  %v3255_v60 = vld [vmem:[#allocation5 + $0x368] sm:$0xf] }
  0x69   :  { %1993 = vmatpush.bf16.msra.mxu3 %v3876_v2  ;;  %v4197_v2 = vld [vmem:[#allocation5 + $0x13c] sm:$0xf0] }
  0x6a   :  { %1955 = vmatpush.bf16.msra.mxu0 %v3276_v10  ;;  %v3543_v10 = vld [vmem:[#allocation5 + $0x5a8] sm:$0xf]  ;;  %v4437_v49 = vld [vmem:[#allocation5 + $0x8bc] sm:$0xf0] }
  0x6b   :  { %1968 = vmatpush.bf16.msra.mxu1 %v3468_v11  ;;  %v4341_v11 = vld [vmem:[#allocation5 + $0x5bc] sm:$0xf0] }
  0x6c   :  { %1981 = vmatpush.bf16.msra.mxu2 %v3660_v12  ;;  %v2968_v12 = vor.u32 %v4197_v2, %v2967_v1  ;;  %v3544_v19 = vor.u32 %v4341_v11, %v3543_v10  ;;  %v3231_v10 = vld [vmem:[#allocation5 + $0x338] sm:$0xf]  ;;  %v4263_v11 = vld [vmem:[#allocation5 + $0x34c] sm:$0xf0] }
  0x6d   :  { %1994 = vmatpush.bf16.msra.mxu3 %v3852_v17  ;;  %v4191_v17 = vld [vmem:[#allocation5 + $0x10c] sm:$0xf0] }
  0x6e   :  { %1956 = vmatpush.bf16.msra.mxu0 %v3252_v23  ;;  %v3519_v23 = vld [vmem:[#allocation5 + $0x578] sm:$0xf] }
  0x6f   :  { %1969 = vmatpush.bf16.msra.mxu1 %v3444_v24  ;;  %v4335_v24 = vld [vmem:[#allocation5 + $0x58c] sm:$0xf0] }
  0x70   :  { %1982 = vmatpush.bf16.msra.mxu2 %v3636_v26  ;;  %v2944_v26 = vor.u32 %v4191_v17, %v2943_v16  ;;  %v3520_v33 = vor.u32 %v4335_v24, %v3519_v23  ;;  %v2823_v16 = vld [vmem:[#allocation5 + $0x8] sm:$0xf]  ;;  %v4161_v17 = vld [vmem:[#allocation5 + $0x1c] sm:$0xf0] }
  0x71   :  { %1995 = vmatpush.bf16.msra.mxu3 %v3828_v30  ;;  %v4185_v30 = vld [vmem:[#allocation5 + $0xdc] sm:$0xf0] }
  0x72   :  { %1957 = vmatpush.bf16.msra.mxu0 %v3228_v38  ;;  %v3495_v38 = vld [vmem:[#allocation5 + $0x548] sm:$0xf]  ;;  %v2920_v40 = vor.u32 %v4185_v30, %v2919_v29  ;;  %v4257_v24 = vld [vmem:[#allocation5 + $0x31c] sm:$0xf0]  ;;  %v4395_v29 = vld [vmem:[#allocation5 + $0x76c] sm:$0xf0] }
  0x73   :  { %1970 = vmatpush.bf16.msra.mxu1 %v3420_v41  ;;  %v3112_v41 = vor.u32 %v4233_v34, %v3111_v31  ;;  %v3951_v30 = vld [vmem:[#allocation5 + $0x8d8] sm:$0xf]  ;;  %v2824_v31 = vor.u32 %v4161_v17, %v2823_v16  ;;  %v4200_v34 = vld [vmem:[#allocation5 + $0x15c] sm:$0xf]  ;;  %v3113_v16 = vld [vmem:[#allocation5 + $0x260] sm:$0xf0] }
  0x74   :  { %1983 = vmatpush.bf16.msra.mxu2 %v3612_v42  ;;  %v3304_v42 = vor.u32 %v4281_v37, %v3303_v36  ;;  %v2993_v36 = vld [vmem:[#allocation5 + $0x170] sm:$0xf0]  ;;  %v3016_v37 = vor.u32 %v4209_v21, %v3015_v20  ;;  %v3663_v20 = vld [vmem:[#allocation5 + $0x698] sm:$0xf]  ;;  %v4371_v21 = vld [vmem:[#allocation5 + $0x6ac] sm:$0xf0] }
  0x75   :  { %1996 = vmatpush.bf16.msra.mxu3 %v3804_v46  ;;  %v3496_v46 = vor.u32 %v4329_v39, %v3495_v38  ;;  %v3208_v38 = vor.u32 %v4257_v24, %v3207_v22  ;;  %v4248_v39 = vld [vmem:[#allocation5 + $0x2dc] sm:$0xf]  ;;  %v2996_v44 = vor.u32 %v4200_v34, %v2993_v36  ;;  %v3855_v22 = vld [vmem:[#allocation5 + $0x818] sm:$0xf]  ;;  %v4419_v24 = vld [vmem:[#allocation5 + $0x82c] sm:$0xf0] }
  0x76   :  { %1958 = vmatpush.bf16.msra.mxu0 %v3204_v53  ;;  %v3088_v53 = vor.u32 %v4227_v47, %v3087_v45  ;;  %v3735_v45 = vld [vmem:[#allocation5 + $0x728] sm:$0xf]  ;;  %v4365_v36 = vld [vmem:[#allocation5 + $0x67c] sm:$0xf0] }
  0x77   :  { %1971 = vmatpush.bf16.msra.mxu1 %v3396_v57  ;;  %v3063_v57 = vld [vmem:[#allocation5 + $0x1e8] sm:$0xf] }
  0x78   :  { %1984 = vmatpush.bf16.msra.mxu2 %v3588_v58  ;;  %v3472_v58 = vor.u32 %v4323_v51, %v3471_v50  ;;  %v3064_v1 = vor.u32 %v4221_v59, %v3063_v57  ;;  %v3927_v47 = vld [vmem:[#allocation5 + $0x8a8] sm:$0xf]  ;;  %v4194_v50 = vld [vmem:[#allocation5 + $0x12c] sm:$0xf]  ;;  %v2969_v51 = vld [vmem:[#allocation5 + $0x140] sm:$0xf0] }
  0x79   :  { %1997 = vmatpush.bf16.msra.mxu3 %v3780_v61  ;;  %1959 = vmatmul.bf16.vlgmr.msra.gmra.mxu0 %v4724_v8  ;;  %v4269_v61 = vld [vmem:[#allocation5 + $0x37c] sm:$0xf0]  ;;  %v3711_v57 = vld [vmem:[#allocation5 + $0x6f8] sm:$0xf]  ;;  %v3639_v34 = vld [vmem:[#allocation5 + $0x668] sm:$0xf] }
  0x7a   :  { %2003 = vmatpush.bf16.msrb.mxu0 %v2992_v62  ;;  %1972 = vmatmul.bf16.vlgmr.msra.gmra.mxu1 %v4728_v15  ;;  %v3447_v62 = vld [vmem:[#allocation5 + $0x4e8] sm:$0xf]  ;;  %v3256_v2 = vor.u32 %v4269_v61, %v3255_v60  ;;  %v3903_v59 = vld [vmem:[#allocation5 + $0x878] sm:$0xf]  ;;  %v4431_v61 = vld [vmem:[#allocation5 + $0x88c] sm:$0xf0] }
  0x7b   :  { %2016 = vmatpush.bf16.msrb.mxu1 %v3184_v63  ;;  %1985 = vmatmul.bf16.vlgmr.msra.gmra.mxu2 %v4736_v32  ;;  %v4317_v63 = vld [vmem:[#allocation5 + $0x4fc] sm:$0xf0] }
  0x7c   :  { %2029 = vmatpush.bf16.msrb.mxu2 %v3376_v0  ;;  %1998 = vmatmul.bf16.vlgmr.msra.gmra.mxu3 %v4738_v35  ;;  %v2872_v0 = vor.u32 %v4173_v56, %v2871_v55  ;;  %v3448_v6 = vor.u32 %v4317_v63, %v3447_v62  ;;  %v3928_v55 = vor.u32 %v4437_v49, %v3927_v47  ;;  %v4188_v62 = vld [vmem:[#allocation5 + $0xfc] sm:$0xf]  ;;  %v2945_v63 = vld [vmem:[#allocation5 + $0x110] sm:$0xf0]  ;;  %v3615_v47 = vld [vmem:[#allocation5 + $0x638] sm:$0xf] }
  0x7d   :  { %2042 = vmatpush.bf16.msrb.mxu3 %v3568_v4  ;;  %v4167_v4 = vld [vmem:[#allocation5 + $0x4c] sm:$0xf0]  ;;  %v2972_v56 = vor.u32 %v4194_v50, %v2969_v51  ;;  %v3807_v49 = vld [vmem:[#allocation5 + $0x7b8] sm:$0xf] }
  0x7e   :  { %2004 = vmatpush.bf16.msrb.mxu0 %v2968_v12  ;;  %v3423_v12 = vld [vmem:[#allocation5 + $0x4b8] sm:$0xf]  ;;  %v4407_v51 = vld [vmem:[#allocation5 + $0x7cc] sm:$0xf0] }
  0x7f   :  { %2017 = vmatpush.bf16.msrb.mxu1 %v3160_v13  ;;  %v4311_v13 = vld [vmem:[#allocation5 + $0x4cc] sm:$0xf0] }
  0x80   :  { %2030 = vmatpush.bf16.msrb.mxu2 %v3352_v14  ;;  %v2848_v14 = vor.u32 %v4167_v4, %v2847_v3  ;;  %v3424_v23 = vor.u32 %v4311_v13, %v3423_v12  ;;  %v3904_v3 = vor.u32 %v4431_v61, %v3903_v59  ;;  %v2948_v4 = vor.u32 %v4188_v62, %v2945_v63  ;;  %v4182_v12 = vld [vmem:[#allocation5 + $0xcc] sm:$0xf]  ;;  %v2921_v13 = vld [vmem:[#allocation5 + $0xe0] sm:$0xf0]  ;;  %v3783_v61 = vld [vmem:[#allocation5 + $0x788] sm:$0xf] }
  0x81   :  { %2043 = vmatpush.bf16.msrb.mxu3 %v3544_v19  ;;  %v3232_v19 = vor.u32 %v4263_v11, %v3231_v10  ;;  %v4425_v11 = vld [vmem:[#allocation5 + $0x85c] sm:$0xf0]  ;;  %v3808_v59 = vor.u32 %v4407_v51, %v3807_v49  ;;  %v4158_v63 = vld [vmem:[#allocation5 + $0xc] sm:$0xf] }
  0x82   :  { %2005 = vmatpush.bf16.msrb.mxu0 %v2944_v26  ;;  %v3399_v26 = vld [vmem:[#allocation5 + $0x488] sm:$0xf]  ;;  %v4401_v62 = vld [vmem:[#allocation5 + $0x79c] sm:$0xf0]  ;;  %v4326_v51 = vld [vmem:[#allocation5 + $0x54c] sm:$0xf] }
  0x83   :  { %2018 = vmatpush.bf16.msrb.mxu1 %v3136_v27  ;;  %v4305_v27 = vld [vmem:[#allocation5 + $0x49c] sm:$0xf0] }
  0x84   :  { %2031 = vmatpush.bf16.msrb.mxu2 %v3328_v28  ;;  %v3759_v28 = vld [vmem:[#allocation5 + $0x758] sm:$0xf] }
  0x85   :  { %2044 = vmatpush.bf16.msrb.mxu3 %v3520_v33  ;;  %v4443_v33 = vld [vmem:[#allocation5 + $0x8ec] sm:$0xf0] }
  0x86   :  { %2006 = vmatpush.bf16.msrb.mxu0 %v2920_v40  ;;  %v3185_v40 = vld [vmem:[#allocation5 + $0x2f0] sm:$0xf0]  ;;  %v3952_v43 = vor.u32 %v4443_v33, %v3951_v30  ;;  %v3664_v30 = vor.u32 %v4371_v21, %v3663_v20 }
  0x87   :  { %2019 = vmatpush.bf16.msrb.mxu1 %v3112_v41  ;;  %v3400_v41 = vor.u32 %v4305_v27, %v3399_v26  ;;  %v3188_v48 = vor.u32 %v4248_v39, %v3185_v40  ;;  %v4176_v26 = vld [vmem:[#allocation5 + $0x9c] sm:$0xf]  ;;  %v2897_v27 = vld [vmem:[#allocation5 + $0xb0] sm:$0xf0]  ;;  %v4413_v39 = vld [vmem:[#allocation5 + $0x7fc] sm:$0xf0] }
  0x88   :  { %2032 = vmatpush.bf16.msrb.mxu2 %v3304_v42  ;;  %v3760_v42 = vor.u32 %v4395_v29, %v3759_v28  ;;  %v4224_v28 = vld [vmem:[#allocation5 + $0x21c] sm:$0xf]  ;;  %v3089_v29 = vld [vmem:[#allocation5 + $0x230] sm:$0xf0]  ;;  %v2900_v33 = vor.u32 %v4176_v26, %v2897_v27  ;;  %v4170_v40 = vld [vmem:[#allocation5 + $0x6c] sm:$0xf] }
  0x89   :  { %2045 = vmatpush.bf16.msrb.mxu3 %v3496_v46  ;;  %v4389_v46 = vld [vmem:[#allocation5 + $0x73c] sm:$0xf0]  ;;  %v3545_v27 = vld [vmem:[#allocation5 + $0x5c0] sm:$0xf0] }
  0x8a   :  { %2007 = vmatpush.bf16.msrb.mxu0 %v2896_v52  ;;  %v4242_v52 = vld [vmem:[#allocation5 + $0x2ac] sm:$0xf] }
  0x8b   :  { %2020 = vmatpush.bf16.msrb.mxu1 %v3088_v53  ;;  %v3161_v53 = vld [vmem:[#allocation5 + $0x2c0] sm:$0xf0] }
  0x8c   :  { %2033 = vmatpush.bf16.msrb.mxu2 %v3280_v54  ;;  %v3736_v54 = vor.u32 %v4389_v46, %v3735_v45  ;;  %v3164_v60 = vor.u32 %v4242_v52, %v3161_v53  ;;  %v4164_v52 = vld [vmem:[#allocation5 + $0x3c] sm:$0xf]  ;;  %v2849_v53 = vld [vmem:[#allocation5 + $0x50] sm:$0xf0] }
  0x8d   :  { %2046 = vmatpush.bf16.msrb.mxu3 %v3472_v58  ;;  %v4383_v58 = vld [vmem:[#allocation5 + $0x70c] sm:$0xf0] }
  0x8e   :  { %2008 = vmatpush.bf16.msrb.mxu0 %v2872_v0  ;;  %v4236_v0 = vld [vmem:[#allocation5 + $0x27c] sm:$0xf] }
  0x8f   :  { %2021 = vmatpush.bf16.msrb.mxu1 %v3064_v1  ;;  %v3137_v1 = vld [vmem:[#allocation5 + $0x290] sm:$0xf0] }
  0x90   :  { %2034 = vmatpush.bf16.msrb.mxu2 %v3256_v2  ;;  %v3712_v2 = vor.u32 %v4383_v58, %v3711_v57  ;;  %v3140_v10 = vor.u32 %v4236_v0, %v3137_v1  ;;  %v3591_v57 = vld [vmem:[#allocation5 + $0x608] sm:$0xf]  ;;  %v4353_v58 = vld [vmem:[#allocation5 + $0x61c] sm:$0xf0]  ;;  %v2825_v1 = vld [vmem:[#allocation5 + $0x20] sm:$0xf0] }
  0x91   :  { %2047 = vmatpush.bf16.msrb.mxu3 %v3448_v6  ;;  %v4377_v6 = vld [vmem:[#allocation5 + $0x6dc] sm:$0xf0] }
  0x92   :  { %2009 = vmatpush.bf16.msrb.mxu0 %v2848_v14  ;;  %v4230_v14 = vld [vmem:[#allocation5 + $0x24c] sm:$0xf]  ;;  %v3688_v17 = vor.u32 %v4377_v6, %v3687_v5  ;;  %v3377_v5 = vld [vmem:[#allocation5 + $0x470] sm:$0xf0]  ;;  %v4344_v6 = vld [vmem:[#allocation5 + $0x5dc] sm:$0xf] }
  0x93   :  { %2022 = vmatpush.bf16.msrb.mxu1 %v3040_v18  ;;  %v3880_v18 = vor.u32 %v4425_v11, %v3879_v7  ;;  %v3592_v7 = vor.u32 %v4353_v58, %v3591_v57  ;;  %v4392_v11 = vld [vmem:[#allocation5 + $0x75c] sm:$0xf]  ;;  %v4422_v57 = vld [vmem:[#allocation5 + $0x84c] sm:$0xf]  ;;  %v3881_v58 = vld [vmem:[#allocation5 + $0x860] sm:$0xf0] }
  0x94   :  { %2035 = vmatpush.bf16.msrb.mxu2 %v3232_v19  ;;  %v2924_v19 = vor.u32 %v4182_v12, %v2921_v13  ;;  %v3761_v12 = vld [vmem:[#allocation5 + $0x770] sm:$0xf0]  ;;  %v3784_v13 = vor.u32 %v4401_v62, %v3783_v61 }
  0x95   :  { %2048 = vmatpush.bf16.msrb.mxu3 %v3424_v23  ;;  %v3116_v23 = vor.u32 %v4230_v14, %v3113_v16  ;;  %v2828_v14 = vor.u32 %v4158_v63, %v2825_v1  ;;  %v4440_v16 = vld [vmem:[#allocation5 + $0x8dc] sm:$0xf]  ;;  %v3764_v21 = vor.u32 %v4392_v11, %v3761_v12  ;;  %v3281_v63 = vld [vmem:[#allocation5 + $0x3b0] sm:$0xf0] }
  0x96   :  { %2010 = vmatpush.bf16.msrb.mxu0 %v2824_v31  ;;  %v3856_v31 = vor.u32 %v4419_v24, %v3855_v22  ;;  %v4290_v22 = vld [vmem:[#allocation5 + $0x42c] sm:$0xf] }
  0x97   :  { %2023 = vmatpush.bf16.msrb.mxu1 %v3016_v37  ;;  %v3831_v37 = vld [vmem:[#allocation5 + $0x7e8] sm:$0xf]  ;;  %v4338_v24 = vld [vmem:[#allocation5 + $0x5ac] sm:$0xf] }
  0x98   :  { %2036 = vmatpush.bf16.msrb.mxu2 %v3208_v38  ;;  %v3092_v38 = vor.u32 %v4224_v28, %v3089_v29  ;;  %v3832_v45 = vor.u32 %v4413_v39, %v3831_v37  ;;  %v4386_v28 = vld [vmem:[#allocation5 + $0x72c] sm:$0xf]  ;;  %v3737_v29 = vld [vmem:[#allocation5 + $0x740] sm:$0xf0]  ;;  %v4284_v37 = vld [vmem:[#allocation5 + $0x3fc] sm:$0xf] }
  0x99   :  { %2049 = vmatpush.bf16.msrb.mxu3 %v3400_v41  ;;  %2011 = vmatmul.bf16.vlgmr.msrb.gmra.mxu0 %v4726_v9  ;;  %v2873_v41 = vld [vmem:[#allocation5 + $0x80] sm:$0xf0]  ;;  %v4332_v39 = vld [vmem:[#allocation5 + $0x57c] sm:$0xf] }
  0x9a   :  { %2055 = vmatpush.bf16.msra.mxu0 %v3760_v42  ;;  %2024 = vmatmul.bf16.vlgmr.msrb.gmra.mxu1 %v4733_v25  ;;  %v4218_v42 = vld [vmem:[#allocation5 + $0x1ec] sm:$0xf]  ;;  %v2876_v46 = vor.u32 %v4170_v40, %v2873_v41  ;;  %v3521_v41 = vld [vmem:[#allocation5 + $0x590] sm:$0xf0] }
  0x9b   :  { %2068 = vmatpush.bf16.msra.mxu1 %v3952_v43  ;;  %2037 = vmatmul.bf16.vlgmr.msrb.gmra.mxu2 %v4724_v8  ;;  %v3065_v43 = vld [vmem:[#allocation5 + $0x200] sm:$0xf0] }
  0x9c   :  { %2081 = vmatpush.bf16.msra.mxu2 %v2996_v44  ;;  %2050 = vmatmul.bf16.vlgmr.msrb.gmra.mxu3 %v4728_v15  ;;  %v3640_v44 = vor.u32 %v4365_v36, %v3639_v34  ;;  %v3068_v50 = vor.u32 %v4218_v42, %v3065_v43  ;;  %v3548_v34 = vor.u32 %v4338_v24, %v3545_v27  ;;  %v4380_v42 = vld [vmem:[#allocation5 + $0x6fc] sm:$0xf]  ;;  %v3713_v43 = vld [vmem:[#allocation5 + $0x710] sm:$0xf0]  ;;  %v3833_v24 = vld [vmem:[#allocation5 + $0x800] sm:$0xf0] }
  0x9d   :  { %2094 = vmatpush.bf16.msra.mxu3 %v3188_v48  ;;  %v4359_v48 = vld [vmem:[#allocation5 + $0x64c] sm:$0xf0]  ;;  %v3740_v36 = vor.u32 %v4386_v28, %v3737_v29  ;;  %v3716_v49 = vor.u32 %v4380_v42, %v3713_v43  ;;  %v3809_v42 = vld [vmem:[#allocation5 + $0x7d0] sm:$0xf0] }
  0x9e   :  { %2056 = vmatpush.bf16.msra.mxu0 %v3736_v54  ;;  %v4212_v54 = vld [vmem:[#allocation5 + $0x1bc] sm:$0xf] }
  0x9f   :  { %2069 = vmatpush.bf16.msra.mxu1 %v3928_v55  ;;  %v3041_v55 = vld [vmem:[#allocation5 + $0x1d0] sm:$0xf0] }
  0xa0   :  { %2082 = vmatpush.bf16.msra.mxu2 %v2972_v56  ;;  %v3616_v56 = vor.u32 %v4359_v48, %v3615_v47  ;;  %v3044_v0 = vor.u32 %v4212_v54, %v3041_v55  ;;  %v4278_v47 = vld [vmem:[#allocation5 + $0x3cc] sm:$0xf]  ;;  %v3524_v48 = vor.u32 %v4332_v39, %v3521_v41  ;;  %v3689_v55 = vld [vmem:[#allocation5 + $0x6e0] sm:$0xf0]  ;;  %v3617_v39 = vld [vmem:[#allocation5 + $0x650] sm:$0xf0] }
  0xa1   :  { %2095 = vmatpush.bf16.msra.mxu3 %v3164_v60  ;;  %v2852_v60 = vor.u32 %v4164_v52, %v2849_v53  ;;  %v3497_v52 = vld [vmem:[#allocation5 + $0x560] sm:$0xf0]  ;;  %v4374_v54 = vld [vmem:[#allocation5 + $0x6cc] sm:$0xf]  ;;  %v4404_v41 = vld [vmem:[#allocation5 + $0x7bc] sm:$0xf] }
  0xa2   :  { %2057 = vmatpush.bf16.msra.mxu0 %v3712_v2  ;;  %v4206_v2 = vld [vmem:[#allocation5 + $0x18c] sm:$0xf]  ;;  %v3500_v61 = vor.u32 %v4326_v51, %v3497_v52  ;;  %v3692_v62 = vor.u32 %v4374_v54, %v3689_v55  ;;  %v3401_v52 = vld [vmem:[#allocation5 + $0x4a0] sm:$0xf0]  ;;  %v3812_v55 = vor.u32 %v4404_v41, %v3809_v42 }
  0xa3   :  { %2070 = vmatpush.bf16.msra.mxu1 %v3904_v3  ;;  %v3017_v3 = vld [vmem:[#allocation5 + $0x1a0] sm:$0xf0]  ;;  %v4302_v51 = vld [vmem:[#allocation5 + $0x48c] sm:$0xf] }
  0xa4   :  { %2083 = vmatpush.bf16.msra.mxu2 %v2948_v4  ;;  %v4296_v4 = vld [vmem:[#allocation5 + $0x45c] sm:$0xf] }
  0xa5   :  { %2096 = vmatpush.bf16.msra.mxu3 %v3140_v10  ;;  %v3569_v10 = vld [vmem:[#allocation5 + $0x5f0] sm:$0xf0] }
  0xa6   :  { %2058 = vmatpush.bf16.msra.mxu0 %v3688_v17  ;;  %v3953_v17 = vld [vmem:[#allocation5 + $0x8f0] sm:$0xf0]  ;;  %v3572_v20 = vor.u32 %v4344_v6, %v3569_v10  ;;  %v4416_v6 = vld [vmem:[#allocation5 + $0x81c] sm:$0xf] }
  0xa7   :  { %2071 = vmatpush.bf16.msra.mxu1 %v3880_v18  ;;  %v3020_v18 = vor.u32 %v4206_v2, %v3017_v3  ;;  %v3956_v26 = vor.u32 %v4440_v16, %v3953_v17  ;;  %v3884_v2 = vor.u32 %v4422_v57, %v3881_v58  ;;  %v3473_v3 = vld [vmem:[#allocation5 + $0x530] sm:$0xf0]  ;;  %v3257_v16 = vld [vmem:[#allocation5 + $0x380] sm:$0xf0]  ;;  %v4314_v17 = vld [vmem:[#allocation5 + $0x4ec] sm:$0xf] }
  0xa8   :  { %2084 = vmatpush.bf16.msra.mxu2 %v2924_v19  ;;  %v3380_v19 = vor.u32 %v4296_v4, %v3377_v5  ;;  %v4368_v4 = vld [vmem:[#allocation5 + $0x69c] sm:$0xf]  ;;  %v3665_v5 = vld [vmem:[#allocation5 + $0x6b0] sm:$0xf0]  ;;  %v3593_v57 = vld [vmem:[#allocation5 + $0x620] sm:$0xf0] }
  0xa9   :  { %2097 = vmatpush.bf16.msra.mxu3 %v3116_v23  ;;  %v3353_v23 = vld [vmem:[#allocation5 + $0x440] sm:$0xf0]  ;;  %v4398_v58 = vld [vmem:[#allocation5 + $0x78c] sm:$0xf] }
  0xaa   :  { %2059 = vmatpush.bf16.msra.mxu0 %v3664_v30  ;;  %v4434_v30 = vld [vmem:[#allocation5 + $0x8ac] sm:$0xf] }
  0xab   :  { %2072 = vmatpush.bf16.msra.mxu1 %v3856_v31  ;;  %v3929_v31 = vld [vmem:[#allocation5 + $0x8c0] sm:$0xf0] }
  0xac   :  { %2085 = vmatpush.bf16.msra.mxu2 %v2900_v33  ;;  %v3356_v33 = vor.u32 %v4290_v22, %v3353_v23  ;;  %v3932_v40 = vor.u32 %v4434_v30, %v3929_v31  ;;  %v3641_v22 = vld [vmem:[#allocation5 + $0x680] sm:$0xf0]  ;;  %v4410_v23 = vld [vmem:[#allocation5 + $0x7ec] sm:$0xf]  ;;  %v4260_v30 = vld [vmem:[#allocation5 + $0x33c] sm:$0xf] }
  0xad   :  { %2098 = vmatpush.bf16.msra.mxu3 %v3092_v38  ;;  %v3329_v38 = vld [vmem:[#allocation5 + $0x410] sm:$0xf0] }
  0xae   :  { %2060 = vmatpush.bf16.msra.mxu0 %v3640_v44  ;;  %v4428_v44 = vld [vmem:[#allocation5 + $0x87c] sm:$0xf]  ;;  %v3233_v31 = vld [vmem:[#allocation5 + $0x350] sm:$0xf0] }
  0xaf   :  { %2073 = vmatpush.bf16.msra.mxu1 %v3832_v45  ;;  %v3905_v45 = vld [vmem:[#allocation5 + $0x890] sm:$0xf0] }
  0xb0   :  { %2086 = vmatpush.bf16.msra.mxu2 %v2876_v46  ;;  %v3332_v46 = vor.u32 %v4284_v37, %v3329_v38  ;;  %v3908_v53 = vor.u32 %v4428_v44, %v3905_v45  ;;  %v3425_v37 = vld [vmem:[#allocation5 + $0x4d0] sm:$0xf0]  ;;  %v4356_v38 = vld [vmem:[#allocation5 + $0x63c] sm:$0xf]  ;;  %v3236_v45 = vor.u32 %v4260_v30, %v3233_v31  ;;  %v2951_v30 = vld [vmem:[#allocation5 + $0x100] sm:$0xf] }
  0xb1   :  { %2099 = vmatpush.bf16.msra.mxu3 %v3068_v50  ;;  %v3305_v50 = vld [vmem:[#allocation5 + $0x3e0] sm:$0xf0]  ;;  %v4192_v31 = vld [vmem:[#allocation5 + $0x114] sm:$0xf0] }
  0xb2   :  { %2061 = vmatpush.bf16.msra.mxu0 %v3616_v56  ;;  %v4756_v56 = vld [vmem:[#allocation7] sm:$0x3f]  ;;  %v2952_v41 = vor.u32 %v4192_v31, %v2951_v30 }
  0xb3   :  { %2074 = vmatpush.bf16.msra.mxu1 %v3808_v59  ;;  %v3308_v59 = vor.u32 %v4278_v47, %v3305_v50  ;;  %v395_v1 = vperm.slane %v4756_v56, 0  ;;  %v3209_v47 = vld [vmem:[#allocation5 + $0x320] sm:$0xf0]  ;;  %v3620_v50 = vor.u32 %v4356_v38, %v3617_v39  ;;  %v4288_v38 = vld [vmem:[#allocation5 + $0x414] sm:$0xf0] }
  0xb4   :  { %2087 = vmatpush.bf16.msra.mxu2 %v2852_v60  ;;  %v4272_v60 = vld [vmem:[#allocation5 + $0x39c] sm:$0xf]  ;;  %v3527_v39 = vld [vmem:[#allocation5 + $0x580] sm:$0xf] }
  0xb5   :  { %2100 = vmatpush.bf16.msra.mxu3 %v3044_v0  ;;  %v4320_v0 = vld [vmem:[#allocation5 + $0x51c] sm:$0xf]  ;;  %v3284_v10 = vor.u32 %v4272_v60, %v3281_v63  ;;  %v2999_v60 = vld [vmem:[#allocation5 + $0x160] sm:$0xf] }
  0xb6   :  { %2062 = vmatpush.bf16.msra.mxu0 %v3592_v7  ;;  %v3857_v7 = vld [vmem:[#allocation5 + $0x830] sm:$0xf0]  ;;  %v1856_v11 = vpop.f32.mrf.mxu0  ;;  %v3476_v12 = vor.u32 %v4320_v0, %v3473_v3  ;;  %v4252_v0 = vld [vmem:[#allocation5 + $0x2f4] sm:$0xf0]  ;;  %v2855_v31 = vld [vmem:[#allocation5 + $0x40] sm:$0xf] }
  0xb7   :  { %2075 = vmatpush.bf16.msra.mxu1 %v3784_v13  ;;  %v3668_v13 = vor.u32 %v4368_v4, %v3665_v5  ;;  %v3404_v4 = vor.u32 %v4302_v51, %v3401_v52  ;;  %v3503_v51 = vld [vmem:[#allocation5 + $0x550] sm:$0xf]  ;;  %v4330_v52 = vld [vmem:[#allocation5 + $0x564] sm:$0xf0] }
  0xb8   :  { %2088 = vmatpush.bf16.msra.mxu2 %v2828_v14  ;;  %v4266_v14 = vld [vmem:[#allocation5 + $0x36c] sm:$0xf] }
  0xb9   :  { %2101 = vmatpush.bf16.msra.mxu3 %v3020_v18  ;;  %2063 = vmatmul.bf16.vlgmr.msra.gmra.mxu0 %v4736_v32  ;;  %v1857_v18 = vadd.f32 %v1856_v11, %v395_v1  ;;  %v3383_v1 = vld [vmem:[#allocation5 + $0x460] sm:$0xf] }
  0xba   :  { %2107 = vmatpush.bf16.msrb.mxu0 %v3380_v19  ;;  %2076 = vmatmul.bf16.vlgmr.msra.gmra.mxu1 %v4738_v35  ;;  %v3860_v19 = vor.u32 %v4416_v6, %v3857_v7  ;;  %v1869_v27 = vpop.f32.mrf.mxu1  ;;  %v3575_v6 = vld [vmem:[#allocation5 + $0x5e0] sm:$0xf]  ;;  %v4348_v7 = vld [vmem:[#allocation5 + $0x5f4] sm:$0xf0] }
  0xbb   :  { %2120 = vmatpush.bf16.msrb.mxu1 %v3572_v20  ;;  %2089 = vmatmul.bf16.vlgmr.msra.gmra.mxu2 %v4726_v9  ;;  %v3449_v20 = vld [vmem:[#allocation5 + $0x500] sm:$0xf0] }
  0xbc   :  { %2133 = vmatpush.bf16.msrb.mxu2 %v3764_v21  ;;  %2102 = vmatmul.bf16.vlgmr.msra.gmra.mxu3 %v4733_v25  ;;  %v4362_v21 = vld [vmem:[#allocation5 + $0x66c] sm:$0xf]  ;;  %v3452_v28 = vor.u32 %v4314_v17, %v3449_v20  ;;  %v4198_v17 = vld [vmem:[#allocation5 + $0x144] sm:$0xf0]  ;;  %v3576_v20 = vor.u32 %v4348_v7, %v3575_v6  ;;  %v4324_v6 = vld [vmem:[#allocation5 + $0x534] sm:$0xf0] }
  0xbd   :  { %2146 = vmatpush.bf16.msrb.mxu3 %v3956_v26  ;;  %v3260_v26 = vor.u32 %v4266_v14, %v3257_v16  ;;  %v3644_v29 = vor.u32 %v4362_v21, %v3641_v22  ;;  %v2975_v16 = vld [vmem:[#allocation5 + $0x130] sm:$0xf]  ;;  %v4246_v21 = vld [vmem:[#allocation5 + $0x2c4] sm:$0xf0]  ;;  %v396_v7 = vperm.slane %v4756_v56, 1 }
  0xbe   :  { %2108 = vmatpush.bf16.msrb.mxu0 %v3356_v33  ;;  %v4308_v33 = vld [vmem:[#allocation5 + $0x4bc] sm:$0xf]  ;;  %v3359_v22 = vld [vmem:[#allocation5 + $0x430] sm:$0xf] }
  0xbf   :  { %2121 = vmatpush.bf16.msrb.mxu1 %v3548_v34  ;;  %v1870_v34 = vadd.f32 %v1869_v27, %v1857_v18  ;;  %v1895_v44 = vpop.f32.mrf.mxu3  ;;  %v3167_v18 = vld [vmem:[#allocation5 + $0x2b0] sm:$0xf]  ;;  %v2976_v27 = vor.u32 %v4198_v17, %v2975_v16  ;;  %v4222_v17 = vld [vmem:[#allocation5 + $0x204] sm:$0xf0] }
  0xc0   :  { %2134 = vmatpush.bf16.msrb.mxu2 %v3740_v36  ;;  %v3836_v36 = vor.u32 %v4410_v23, %v3833_v24  ;;  %v4294_v23 = vld [vmem:[#allocation5 + $0x444] sm:$0xf0]  ;;  %v3551_v24 = vld [vmem:[#allocation5 + $0x5b0] sm:$0xf] }
  0xc1   :  { %2147 = vmatpush.bf16.msrb.mxu3 %v3932_v40  ;;  %v1882_v40 = vpop.f32.mrf.mxu2 }
  0xc2   :  { %2109 = vmatpush.bf16.msrb.mxu0 %v3332_v46  ;;  %v1883_v43 = vadd.f32 %v1882_v40, %v1870_v34  ;;  %v4254_v46 = vld [vmem:[#allocation5 + $0x30c] sm:$0xf]  ;;  %v1871_v3 = vpop.f32.mrf.mxu1  ;;  %v4336_v40 = vld [vmem:[#allocation5 + $0x594] sm:$0xf0] }
  0xc3   :  { %2122 = vmatpush.bf16.msrb.mxu1 %v3524_v48  ;;  %v1858_v48 = vpop.f32.mrf.mxu0  ;;  %v3212_v63 = vor.u32 %v4254_v46, %v3209_v47  ;;  %v3119_v46 = vld [vmem:[#allocation5 + $0x250] sm:$0xf]  ;;  %v3528_v47 = vor.u32 %v4336_v40, %v3527_v39  ;;  %v4276_v3 = vld [vmem:[#allocation5 + $0x3b4] sm:$0xf0]  ;;  %v3239_v39 = vld [vmem:[#allocation5 + $0x340] sm:$0xf] }
  0xc4   :  { %2135 = vmatpush.bf16.msrb.mxu2 %v3716_v49  ;;  %v3428_v49 = vor.u32 %v4308_v33, %v3425_v37  ;;  %v4759_v54 = vadd.f32 %v1895_v44, %v1883_v43  ;;  %v3143_v33 = vld [vmem:[#allocation5 + $0x280] sm:$0xf]  ;;  %v2927_v44 = vld [vmem:[#allocation5 + $0xd0] sm:$0xf]  ;;  %v4234_v48 = vld [vmem:[#allocation5 + $0x264] sm:$0xf0] }
  0xc5   :  { %2148 = vmatpush.bf16.msrb.mxu3 %v3908_v53  ;;  %v4350_v53 = vld [vmem:[#allocation5 + $0x60c] sm:$0xf]  ;;  %v3335_v37 = vld [vmem:[#allocation5 + $0x400] sm:$0xf]  ;;  %v4264_v40 = vld [vmem:[#allocation5 + $0x354] sm:$0xf0] }
  0xc6   :  { %2110 = vmatpush.bf16.msrb.mxu0 %v3308_v59  ;;  %v3785_v59 = vld [vmem:[#allocation5 + $0x7a0] sm:$0xf0]  ;;  %v3596_v5 = vor.u32 %v4350_v53, %v3593_v57  ;;  %v3336_v43 = vor.u32 %v4288_v38, %v3335_v37  ;;  %v4216_v38 = vld [vmem:[#allocation5 + $0x1d4] sm:$0xf0] }
  0xc7   :  { %2123 = vmatpush.bf16.msrb.mxu1 %v3500_v61  ;;  %v4204_v61 = vld [vmem:[#allocation5 + $0x174] sm:$0xf0] }
  0xc8   :  { %2136 = vmatpush.bf16.msrb.mxu2 %v3692_v62  ;;  %v3191_v62 = vld [vmem:[#allocation5 + $0x2e0] sm:$0xf]  ;;  %v3000_v11 = vor.u32 %v4204_v61, %v2999_v60 }
  0xc9   :  { %2149 = vmatpush.bf16.msrb.mxu3 %v3884_v2  ;;  %v4300_v2 = vld [vmem:[#allocation5 + $0x474] sm:$0xf0]  ;;  %v2903_v61 = vld [vmem:[#allocation5 + $0xa0] sm:$0xf] }
  0xca   :  { %2111 = vmatpush.bf16.msrb.mxu0 %v3284_v10  ;;  %v3788_v10 = vor.u32 %v4398_v58, %v3785_v59  ;;  %v3384_v14 = vor.u32 %v4300_v2, %v3383_v1  ;;  %v3120_v59 = vor.u32 %v4234_v48, %v3119_v46  ;;  %v4228_v1 = vld [vmem:[#allocation5 + $0x234] sm:$0xf0]  ;;  %v3287_v2 = vld [vmem:[#allocation5 + $0x3a0] sm:$0xf]  ;;  %v3023_v48 = vld [vmem:[#allocation5 + $0x190] sm:$0xf] }
  0xcb   :  { %2124 = vmatpush.bf16.msrb.mxu1 %v3476_v12  ;;  %v1884_v12 = vpop.f32.mrf.mxu2 }
  0xcc   :  { %2137 = vmatpush.bf16.msrb.mxu2 %v3668_v13  ;;  %v3192_v13 = vor.u32 %v4252_v0, %v3191_v62  ;;  %v4180_v62 = vld [vmem:[#allocation5 + $0xb4] sm:$0xf0]  ;;  %v3504_v0 = vor.u32 %v4330_v52, %v3503_v51  ;;  %v2879_v12 = vld [vmem:[#allocation5 + $0x70] sm:$0xf]  ;;  %v4258_v52 = vld [vmem:[#allocation5 + $0x324] sm:$0xf0] }
  0xcd   :  { %2150 = vmatpush.bf16.msrb.mxu3 %v3860_v19  ;;  %v1897_v19 = vpop.f32.mrf.mxu3 }
  0xce   :  { %2112 = vmatpush.bf16.msrb.mxu0 %v3260_v26  ;;  %v4342_v26 = vld [vmem:[#allocation5 + $0x5c4] sm:$0xf0] }
  0xcf   :  { %2125 = vmatpush.bf16.msrb.mxu1 %v3452_v28  ;;  %v3168_v28 = vor.u32 %v4246_v21, %v3167_v18  ;;  %v3552_v34 = vor.u32 %v4342_v26, %v3551_v24  ;;  %v3263_v18 = vld [vmem:[#allocation5 + $0x370] sm:$0xf]  ;;  %v4270_v19 = vld [vmem:[#allocation5 + $0x384] sm:$0xf0] }
  0xd0   :  { %2138 = vmatpush.bf16.msrb.mxu2 %v3644_v29  ;;  %v3360_v29 = vor.u32 %v4294_v23, %v3359_v22  ;;  %v3455_v21 = vld [vmem:[#allocation5 + $0x4f0] sm:$0xf]  ;;  %v4318_v22 = vld [vmem:[#allocation5 + $0x504] sm:$0xf0]  ;;  %v3264_v30 = vor.u32 %v4270_v19, %v3263_v18  ;;  %v4195_v18 = vld [vmem:[#allocation5 + $0x134] sm:$0xf] }
  0xd1   :  { %2151 = vmatpush.bf16.msrb.mxu3 %v3836_v36  ;;  %v4240_v36 = vld [vmem:[#allocation5 + $0x294] sm:$0xf0]  ;;  %v3456_v37 = vor.u32 %v4318_v22, %v3455_v21  ;;  %v2977_v19 = vld [vmem:[#allocation5 + $0x148] sm:$0xf0] }
  0xd2   :  { %2113 = vmatpush.bf16.msrb.mxu0 %v3236_v45  ;;  %v3144_v42 = vor.u32 %v4240_v36, %v3143_v33  ;;  %v4186_v45 = vld [vmem:[#allocation5 + $0xe4] sm:$0xf0]  ;;  %v4168_v33 = vld [vmem:[#allocation5 + $0x54] sm:$0xf0]  ;;  %v3169_v21 = vld [vmem:[#allocation5 + $0x2c8] sm:$0xf0] }
  0xd3   :  { %2126 = vmatpush.bf16.msrb.mxu1 %v3428_v49  ;;  %v3311_v49 = vld [vmem:[#allocation5 + $0x3d0] sm:$0xf] }
  0xd4   :  { %2139 = vmatpush.bf16.msrb.mxu2 %v3620_v50  ;;  %v4282_v50 = vld [vmem:[#allocation5 + $0x3e4] sm:$0xf0] }
  0xd5   :  { %2152 = vmatpush.bf16.msrb.mxu3 %v3812_v55  ;;  %v2928_v55 = vor.u32 %v4186_v45, %v2927_v44  ;;  %v3312_v60 = vor.u32 %v4282_v50, %v3311_v49  ;;  %v2831_v44 = vld [vmem:[#allocation5 + $0x10] sm:$0xf]  ;;  %v4162_v45 = vld [vmem:[#allocation5 + $0x24] sm:$0xf0] }
  0xd6   :  { %2114 = vmatpush.bf16.msrb.mxu0 %v3212_v63  ;;  %v1908_v53 = vpop.f32.mrf.mxu0  ;;  %v3095_v63 = vld [vmem:[#allocation5 + $0x220] sm:$0xf]  ;;  %v4210_v49 = vld [vmem:[#allocation5 + $0x1a4] sm:$0xf0]  ;;  %v3215_v50 = vld [vmem:[#allocation5 + $0x310] sm:$0xf] }
  0xd7   :  { %2127 = vmatpush.bf16.msrb.mxu1 %v3404_v4  ;;  %v1909_v57 = vadd.f32 %v1908_v53, %v4759_v54  ;;  %v1921_v58 = vpop.f32.mrf.mxu1  ;;  %v2904_v54 = vor.u32 %v4180_v62, %v2903_v61  ;;  %v3407_v53 = vld [vmem:[#allocation5 + $0x490] sm:$0xf]  ;;  %v2832_v62 = vor.u32 %v4162_v45, %v2831_v44  ;;  %v4426_v45 = vld [vmem:[#allocation5 + $0x864] sm:$0xf0] }
  0xd8   :  { %2140 = vmatpush.bf16.msrb.mxu2 %v3596_v5  ;;  %v3479_v5 = vld [vmem:[#allocation5 + $0x520] sm:$0xf] }
  0xd9   :  { %2153 = vmatpush.bf16.msrb.mxu3 %v3788_v10  ;;  %2115 = vmatmul.bf16.vlgmr.msrb.gmra.mxu0 %v4724_v8  ;;  %v4766_v4 = vadd.f32 %v1921_v58, %v1909_v57  ;;  %v3096_v10 = vor.u32 %v4228_v1, %v3095_v63  ;;  %v3480_v16 = vor.u32 %v4324_v6, %v3479_v5  ;;  %v3767_v58 = vld [vmem:[#allocation5 + $0x760] sm:$0xf]  ;;  %v4444_v63 = vld [vmem:[#allocation5 + $0x8f4] sm:$0xf0]  ;;  %v3001_v1 = vld [vmem:[#allocation5 + $0x178] sm:$0xf0] }
  0xda   :  { %2159 = vmatpush.bf16.msra.mxu0 %v3000_v11  ;;  %2128 = vmatmul.bf16.vlgmr.msrb.gmra.mxu1 %v4728_v15  ;;  %v3288_v11 = vor.u32 %v4276_v3, %v3287_v2  ;;  %v3024_v2 = vor.u32 %v4210_v49, %v3023_v48  ;;  %v3216_v3 = vor.u32 %v4258_v52, %v3215_v50  ;;  %v4249_v5 = vld [vmem:[#allocation5 + $0x2e4] sm:$0xf]  ;;  %v3193_v6 = vld [vmem:[#allocation5 + $0x2f8] sm:$0xf0]  ;;  %v4231_v48 = vld [vmem:[#allocation5 + $0x254] sm:$0xf] }
  0xdb   :  { %2172 = vmatpush.bf16.msra.mxu1 %v3192_v13  ;;  %2141 = vmatmul.bf16.vlgmr.msrb.gmra.mxu2 %v4736_v32  ;;  %v4174_v13 = vld [vmem:[#allocation5 + $0x84] sm:$0xf0]  ;;  %v3121_v49 = vld [vmem:[#allocation5 + $0x268] sm:$0xf0] }
  0xdc   :  { %2185 = vmatpush.bf16.msra.mxu2 %v3384_v14  ;;  %2154 = vmatmul.bf16.vlgmr.msrb.gmra.mxu3 %v4738_v35  ;;  %v3071_v14 = vld [vmem:[#allocation5 + $0x1f0] sm:$0xf] }
  0xdd   :  { %2198 = vmatpush.bf16.msra.mxu3 %v3576_v20 }
  0xde   :  { %2160 = vmatpush.bf16.msra.mxu0 %v2976_v27  ;;  %v1934_v20 = vpop.f32.mrf.mxu2  ;;  %v1910_v26 = vpop.f32.mrf.mxu0  ;;  %v2880_v27 = vor.u32 %v4174_v13, %v2879_v12  ;;  %v3743_v12 = vld [vmem:[#allocation5 + $0x730] sm:$0xf]  ;;  %v4390_v13 = vld [vmem:[#allocation5 + $0x744] sm:$0xf0] }
  0xdf   :  { %2173 = vmatpush.bf16.msra.mxu1 %v3168_v28  ;;  %v1935_v23 = vadd.f32 %v1934_v20, %v396_v7  ;;  %v1947_v24 = vpop.f32.mrf.mxu3  ;;  %v1923_v28 = vpop.f32.mrf.mxu1  ;;  %v4243_v20 = vld [vmem:[#allocation5 + $0x2b4] sm:$0xf]  ;;  %v3744_v22 = vor.u32 %v4390_v13, %v3743_v12  ;;  %v3719_v26 = vld [vmem:[#allocation5 + $0x700] sm:$0xf]  ;;  %v4414_v13 = vld [vmem:[#allocation5 + $0x804] sm:$0xf0] }
  0xe0   :  { %2186 = vmatpush.bf16.msra.mxu2 %v3360_v29  ;;  %v3072_v29 = vor.u32 %v4222_v17, %v3071_v14  ;;  %v3935_v14 = vld [vmem:[#allocation5 + $0x8b0] sm:$0xf]  ;;  %v4438_v17 = vld [vmem:[#allocation5 + $0x8c4] sm:$0xf0]  ;;  %v3911_v28 = vld [vmem:[#allocation5 + $0x880] sm:$0xf] }
  0xe1   :  { %2199 = vmatpush.bf16.msra.mxu3 %v3552_v34  ;;  %v3047_v34 = vld [vmem:[#allocation5 + $0x1c0] sm:$0xf]  ;;  %v4769_v36 = vadd.f32 %v1947_v24, %v1935_v23  ;;  %v3936_v23 = vor.u32 %v4438_v17, %v3935_v14  ;;  %v2980_v24 = vor.u32 %v4195_v18, %v2977_v19  ;;  %v4171_v14 = vld [vmem:[#allocation5 + $0x74] sm:$0xf] }
  0xe2   :  { %2161 = vmatpush.bf16.msra.mxu0 %v2952_v41  ;;  %v3431_v41 = vld [vmem:[#allocation5 + $0x4c0] sm:$0xf]  ;;  %v3048_v46 = vor.u32 %v4216_v38, %v3047_v34  ;;  %v4237_v34 = vld [vmem:[#allocation5 + $0x284] sm:$0xf]  ;;  %v4219_v19 = vld [vmem:[#allocation5 + $0x1f4] sm:$0xf] }
  0xe3   :  { %2174 = vmatpush.bf16.msra.mxu1 %v3144_v42  ;;  %v4312_v42 = vld [vmem:[#allocation5 + $0x4d4] sm:$0xf0] }
  0xe4   :  { %2187 = vmatpush.bf16.msra.mxu2 %v3336_v43  ;;  %v2856_v43 = vor.u32 %v4168_v33, %v2855_v31  ;;  %v3432_v51 = vor.u32 %v4312_v42, %v3431_v41  ;;  %v4189_v31 = vld [vmem:[#allocation5 + $0x104] sm:$0xf]  ;;  %v2953_v33 = vld [vmem:[#allocation5 + $0x118] sm:$0xf0]  ;;  %v3695_v41 = vld [vmem:[#allocation5 + $0x6d0] sm:$0xf] }
  0xe5   :  { %2200 = vmatpush.bf16.msra.mxu3 %v3528_v47  ;;  %v3240_v47 = vor.u32 %v4264_v40, %v3239_v39  ;;  %v2956_v40 = vor.u32 %v4189_v31, %v2953_v33  ;;  %v4378_v42 = vld [vmem:[#allocation5 + $0x6e4] sm:$0xf0]  ;;  %v4408_v33 = vld [vmem:[#allocation5 + $0x7d4] sm:$0xf0] }
  0xe6   :  { %2162 = vmatpush.bf16.msra.mxu0 %v2928_v55  ;;  %v4306_v55 = vld [vmem:[#allocation5 + $0x4a4] sm:$0xf0]  ;;  %v1936_v57 = vpop.f32.mrf.mxu2  ;;  %v3696_v50 = vor.u32 %v4378_v42, %v3695_v41  ;;  %v3599_v41 = vld [vmem:[#allocation5 + $0x610] sm:$0xf] }
  0xe7   :  { %2175 = vmatpush.bf16.msra.mxu1 %v3120_v59  ;;  %v4396_v59 = vld [vmem:[#allocation5 + $0x774] sm:$0xf0]  ;;  %v1949_v61 = vpop.f32.mrf.mxu3  ;;  %v3408_v7 = vor.u32 %v4306_v55, %v3407_v53  ;;  %v3671_v55 = vld [vmem:[#allocation5 + $0x6a0] sm:$0xf]  ;;  %v4354_v42 = vld [vmem:[#allocation5 + $0x624] sm:$0xf0] }
  0xe8   :  { %2188 = vmatpush.bf16.msra.mxu2 %v3312_v60  ;;  %v3959_v60 = vld [vmem:[#allocation5 + $0x8e0] sm:$0xf]  ;;  %v4372_v57 = vld [vmem:[#allocation5 + $0x6b4] sm:$0xf0]  ;;  %v3124_v61 = vor.u32 %v4231_v48, %v3121_v49 }
  0xe9   :  { %2201 = vmatpush.bf16.msra.mxu3 %v3504_v0  ;;  %v4201_v0 = vld [vmem:[#allocation5 + $0x164] sm:$0xf] }
  0xea   :  { %2163 = vmatpush.bf16.msra.mxu0 %v2904_v54  ;;  %v3768_v54 = vor.u32 %v4396_v59, %v3767_v58  ;;  %v3863_v58 = vld [vmem:[#allocation5 + $0x820] sm:$0xf] }
  0xeb   :  { %2176 = vmatpush.bf16.msra.mxu1 %v3096_v10  ;;  %v3960_v10 = vor.u32 %v4444_v63, %v3959_v60  ;;  %v4177_v63 = vld [vmem:[#allocation5 + $0xa4] sm:$0xf] }
  0xec   :  { %2189 = vmatpush.bf16.msra.mxu2 %v3288_v11  ;;  %v3004_v11 = vor.u32 %v4201_v0, %v3001_v1  ;;  %v2905_v0 = vld [vmem:[#allocation5 + $0xb8] sm:$0xf0]  ;;  %v4225_v1 = vld [vmem:[#allocation5 + $0x224] sm:$0xf] }
  0xed   :  { %2202 = vmatpush.bf16.msra.mxu3 %v3480_v16  ;;  %v3196_v16 = vor.u32 %v4249_v5, %v3193_v6  ;;  %v3672_v5 = vor.u32 %v4372_v57, %v3671_v55  ;;  %v4297_v55 = vld [vmem:[#allocation5 + $0x464] sm:$0xf]  ;;  %v3385_v57 = vld [vmem:[#allocation5 + $0x478] sm:$0xf0] }
  0xee   :  { %2164 = vmatpush.bf16.msra.mxu0 %v2880_v27  ;;  %v4384_v27 = vld [vmem:[#allocation5 + $0x714] sm:$0xf0] }
  0xef   :  { %2177 = vmatpush.bf16.msra.mxu1 %v3072_v29  ;;  %v3172_v29 = vor.u32 %v4243_v20, %v3169_v21  ;;  %v3720_v38 = vor.u32 %v4384_v27, %v3719_v26  ;;  %v3073_v20 = vld [vmem:[#allocation5 + $0x208] sm:$0xf0]  ;;  %v3623_v27 = vld [vmem:[#allocation5 + $0x640] sm:$0xf] }
  0xf0   :  { %2190 = vmatpush.bf16.msra.mxu2 %v3264_v30  ;;  %v4432_v30 = vld [vmem:[#allocation5 + $0x894] sm:$0xf0]  ;;  %v3076_v31 = vor.u32 %v4219_v19, %v3073_v20 }
  0xf1   :  { %2203 = vmatpush.bf16.msra.mxu3 %v3456_v37  ;;  %v3145_v37 = vld [vmem:[#allocation5 + $0x298] sm:$0xf0]  ;;  %v3912_v39 = vor.u32 %v4432_v30, %v3911_v28  ;;  %v4360_v28 = vld [vmem:[#allocation5 + $0x654] sm:$0xf0] }
  0xf2   :  { %2165 = vmatpush.bf16.msra.mxu0 %v2856_v43  ;;  %v3887_v43 = vld [vmem:[#allocation5 + $0x850] sm:$0xf]  ;;  %v3148_v44 = vor.u32 %v4237_v34, %v3145_v37  ;;  %v4165_v34 = vld [vmem:[#allocation5 + $0x44] sm:$0xf]  ;;  %v2857_v37 = vld [vmem:[#allocation5 + $0x58] sm:$0xf0] }
  0xf3   :  { %2178 = vmatpush.bf16.msra.mxu1 %v3048_v46  ;;  %v4183_v46 = vld [vmem:[#allocation5 + $0xd4] sm:$0xf]  ;;  %v3888_v52 = vor.u32 %v4426_v45, %v3887_v43  ;;  %v3791_v45 = vld [vmem:[#allocation5 + $0x790] sm:$0xf] }
  0xf4   :  { %2191 = vmatpush.bf16.msra.mxu2 %v3240_v47  ;;  %v2929_v47 = vld [vmem:[#allocation5 + $0xe8] sm:$0xf0] }
  0xf5   :  { %2204 = vmatpush.bf16.msra.mxu3 %v3432_v51  ;;  %v2932_v53 = vor.u32 %v4183_v46, %v2929_v47  ;;  %v4402_v46 = vld [vmem:[#allocation5 + $0x7a4] sm:$0xf0]  ;;  %v4159_v47 = vld [vmem:[#allocation5 + $0x14] sm:$0xf] }
  0xf6   :  { %2166 = vmatpush.bf16.msra.mxu0 %v2832_v62  ;;  %v1960_v51 = vpop.f32.mrf.mxu0  ;;  %v4420_v62 = vld [vmem:[#allocation5 + $0x834] sm:$0xf0] }
  0xf7   :  { %2179 = vmatpush.bf16.msra.mxu1 %v3024_v2  ;;  %v1961_v59 = vadd.f32 %v1960_v51, %v4769_v36  ;;  %v1973_v60 = vpop.f32.mrf.mxu1  ;;  %v3097_v2 = vld [vmem:[#allocation5 + $0x238] sm:$0xf0]  ;;  %v3864_v6 = vor.u32 %v4420_v62, %v3863_v58  ;;  %v4207_v51 = vld [vmem:[#allocation5 + $0x194] sm:$0xf]  ;;  %v4345_v58 = vld [vmem:[#allocation5 + $0x5e4] sm:$0xf] }
  0xf8   :  { %2192 = vmatpush.bf16.msra.mxu2 %v3216_v3  ;;  %v3100_v36 = vor.u32 %v4225_v1, %v3097_v2  ;;  %v3769_v62 = vld [vmem:[#allocation5 + $0x778] sm:$0xf0]  ;;  %v4441_v1 = vld [vmem:[#allocation5 + $0x8e4] sm:$0xf] }
  0xf9   :  { %2205 = vmatpush.bf16.msra.mxu3 %v3408_v7  ;;  %2167 = vmatmul.bf16.vlgmr.msra.gmra.mxu0 %v4726_v9  ;;  %v1974_v3 = vadd.f32 %v1973_v60, %v1961_v59  ;;  %v2908_v7 = vor.u32 %v4177_v63, %v2905_v0  ;;  %v3600_v59 = vor.u32 %v4354_v42, %v3599_v41  ;;  %v3577_v60 = vld [vmem:[#allocation5 + $0x5f8] sm:$0xf0]  ;;  %v3505_v42 = vld [vmem:[#allocation5 + $0x568] sm:$0xf0] }
  0xfa   :  { %2211 = vmatpush.bf16.msrb.mxu0 %v3768_v54  ;;  %2180 = vmatmul.bf16.vlgmr.msra.gmra.mxu1 %v4733_v25  ;;  %v3647_v54 = vld [vmem:[#allocation5 + $0x670] sm:$0xf]  ;;  %v3792_v63 = vor.u32 %v4402_v46, %v3791_v45  ;;  %v3961_v2 = vld [vmem:[#allocation5 + $0x8f8] sm:$0xf0]  ;;  %v4423_v45 = vld [vmem:[#allocation5 + $0x854] sm:$0xf] }
  0xfb   :  { %2224 = vmatpush.bf16.msrb.mxu1 %v3960_v10  ;;  %2193 = vmatmul.bf16.vlgmr.msra.gmra.mxu2 %v4724_v8  ;;  %v4366_v10 = vld [vmem:[#allocation5 + $0x684] sm:$0xf0] }
  0xfc   :  { %2237 = vmatpush.bf16.msrb.mxu2 %v3004_v11  ;;  %2206 = vmatmul.bf16.vlgmr.msra.gmra.mxu3 %v4728_v15  ;;  %v3839_v11 = vld [vmem:[#allocation5 + $0x7f0] sm:$0xf]  ;;  %v3648_v21 = vor.u32 %v4366_v10, %v3647_v54  ;;  %v4291_v54 = vld [vmem:[#allocation5 + $0x434] sm:$0xf]  ;;  %v3361_v10 = vld [vmem:[#allocation5 + $0x448] sm:$0xf0] }
  0xfd   :  { %2250 = vmatpush.bf16.msrb.mxu3 %v3196_v16  ;;  %v2881_v16 = vld [vmem:[#allocation5 + $0x88] sm:$0xf0] }
  0xfe   :  { %2212 = vmatpush.bf16.msrb.mxu0 %v3744_v22  ;;  %v1986_v12 = vpop.f32.mrf.mxu2  ;;  %v2884_v26 = vor.u32 %v4171_v14, %v2881_v16  ;;  %v3745_v14 = vld [vmem:[#allocation5 + $0x748] sm:$0xf0]  ;;  %v4435_v16 = vld [vmem:[#allocation5 + $0x8b4] sm:$0xf] }
  0xff   :  { %2225 = vmatpush.bf16.msrb.mxu1 %v3936_v23  ;;  %v1987_v17 = vadd.f32 %v1986_v12, %v1974_v3  ;;  %v1999_v18 = vpop.f32.mrf.mxu3  ;;  %v1962_v23 = vpop.f32.mrf.mxu0  ;;  %v3964_v12 = vor.u32 %v4441_v1, %v3961_v2  ;;  %v3265_v1 = vld [vmem:[#allocation5 + $0x388] sm:$0xf0]  ;;  %v4315_v2 = vld [vmem:[#allocation5 + $0x4f4] sm:$0xf] }
 0x100   :  { %2238 = vmatpush.bf16.msrb.mxu2 %v2980_v24  ;;  %v3840_v24 = vor.u32 %v4414_v13, %v3839_v11  ;;  %v1975_v30 = vpop.f32.mrf.mxu1  ;;  %v4339_v11 = vld [vmem:[#allocation5 + $0x5b4] sm:$0xf]  ;;  %v3337_v23 = vld [vmem:[#allocation5 + $0x418] sm:$0xf0] }
 0x101   :  { %2251 = vmatpush.bf16.msrb.mxu3 %v3172_v29  ;;  %v4776_v22 = vadd.f32 %v1999_v18, %v1987_v17  ;;  %v3815_v29 = vld [vmem:[#allocation5 + $0x7c0] sm:$0xf]  ;;  %v4387_v13 = vld [vmem:[#allocation5 + $0x734] sm:$0xf]  ;;  %v3937_v17 = vld [vmem:[#allocation5 + $0x8c8] sm:$0xf0]  ;;  %v3364_v18 = vor.u32 %v4291_v54, %v3361_v10 }
 0x102   :  { %2213 = vmatpush.bf16.msrb.mxu0 %v3720_v38  ;;  %v4213_v38 = vld [vmem:[#allocation5 + $0x1c4] sm:$0xf]  ;;  %v3816_v43 = vor.u32 %v4408_v33, %v3815_v29  ;;  %v3748_v20 = vor.u32 %v4387_v13, %v3745_v14  ;;  %v3721_v29 = vld [vmem:[#allocation5 + $0x718] sm:$0xf0]  ;;  %v4411_v10 = vld [vmem:[#allocation5 + $0x7f4] sm:$0xf] }
 0x103   :  { %2226 = vmatpush.bf16.msrb.mxu1 %v3912_v39  ;;  %v3049_v39 = vld [vmem:[#allocation5 + $0x1d8] sm:$0xf0]  ;;  %v4429_v30 = vld [vmem:[#allocation5 + $0x884] sm:$0xf] }
 0x104   :  { %2239 = vmatpush.bf16.msrb.mxu2 %v2956_v40  ;;  %v3624_v40 = vor.u32 %v4360_v28, %v3623_v27  ;;  %v3052_v49 = vor.u32 %v4213_v38, %v3049_v39  ;;  %v3529_v27 = vld [vmem:[#allocation5 + $0x598] sm:$0xf0]  ;;  %v4381_v28 = vld [vmem:[#allocation5 + $0x704] sm:$0xf]  ;;  %v4279_v38 = vld [vmem:[#allocation5 + $0x3d4] sm:$0xf] }
 0x105   :  { %2252 = vmatpush.bf16.msrb.mxu3 %v3148_v44  ;;  %v2860_v44 = vor.u32 %v4165_v34, %v2857_v37  ;;  %v3724_v37 = vor.u32 %v4381_v28, %v3721_v29  ;;  %v3313_v39 = vld [vmem:[#allocation5 + $0x3e8] sm:$0xf0]  ;;  %v3817_v28 = vld [vmem:[#allocation5 + $0x7d8] sm:$0xf0] }
 0x106   :  { %2214 = vmatpush.bf16.msrb.mxu0 %v3696_v50  ;;  %v1988_v48 = vpop.f32.mrf.mxu2  ;;  %v2833_v50 = vld [vmem:[#allocation5 + $0x28] sm:$0xf0] }
 0x107   :  { %2227 = vmatpush.bf16.msrb.mxu1 %v3888_v52  ;;  %v3025_v52 = vld [vmem:[#allocation5 + $0x1a8] sm:$0xf0]  ;;  %v2836_v0 = vor.u32 %v4159_v47, %v2833_v50  ;;  %v3316_v47 = vor.u32 %v4279_v38, %v3313_v39  ;;  %v4273_v50 = vld [vmem:[#allocation5 + $0x3a4] sm:$0xf]  ;;  %v397_v38 = vperm.slane %v4756_v56, 2 }
 0x108   :  { %2240 = vmatpush.bf16.msrb.mxu2 %v2932_v53  ;;  %v2001_v53 = vpop.f32.mrf.mxu3  ;;  %v3028_v3 = vor.u32 %v4207_v51, %v3025_v52  ;;  %v3289_v51 = vld [vmem:[#allocation5 + $0x3b8] sm:$0xf0]  ;;  %v4321_v52 = vld [vmem:[#allocation5 + $0x524] sm:$0xf] }
 0x109   :  { %2253 = vmatpush.bf16.msrb.mxu3 %v3124_v61  ;;  %v4393_v61 = vld [vmem:[#allocation5 + $0x764] sm:$0xf] }
 0x10a   :  { %2215 = vmatpush.bf16.msrb.mxu0 %v3672_v5  ;;  %v3388_v5 = vor.u32 %v4297_v55, %v3385_v57  ;;  %v3481_v55 = vld [vmem:[#allocation5 + $0x538] sm:$0xf0]  ;;  %v4369_v57 = vld [vmem:[#allocation5 + $0x6a4] sm:$0xf] }
 0x10b   :  { %2228 = vmatpush.bf16.msrb.mxu1 %v3864_v6  ;;  %v3580_v6 = vor.u32 %v4345_v58, %v3577_v60  ;;  %v3673_v58 = vld [vmem:[#allocation5 + $0x6b8] sm:$0xf0] }
 0x10c   :  { %2241 = vmatpush.bf16.msrb.mxu2 %v2908_v7  ;;  %v3772_v7 = vor.u32 %v4393_v61, %v3769_v62  ;;  %v3865_v60 = vld [vmem:[#allocation5 + $0x838] sm:$0xf0]  ;;  %v3292_v61 = vor.u32 %v4273_v50, %v3289_v51  ;;  %v3484_v62 = vor.u32 %v4321_v52, %v3481_v55 }
 0x10d   :  { %2254 = vmatpush.bf16.msrb.mxu3 %v3100_v36  ;;  %v3553_v36 = vld [vmem:[#allocation5 + $0x5c8] sm:$0xf0]  ;;  %v4452_v56 = vld [vmem:[#allocation8 + $0x38] sm:$0xff] }
 0x10e   :  { %2216 = vmatpush.bf16.msrb.mxu0 %v3648_v21  ;;  %v3556_v19 = vor.u32 %v4339_v11, %v3553_v36  ;;  %v4285_v21 = vld [vmem:[#allocation5 + $0x404] sm:$0xf]  ;;  %v3841_v11 = vld [vmem:[#allocation5 + $0x808] sm:$0xf0] }
 0x10f   :  { %2229 = vmatpush.bf16.msrb.mxu1 %v3840_v24  ;;  %v4333_v24 = vld [vmem:[#allocation5 + $0x584] sm:$0xf]  ;;  %v3340_v33 = vor.u32 %v4285_v21, %v3337_v23  ;;  %v3844_v21 = vor.u32 %v4411_v10, %v3841_v11  ;;  %v3433_v23 = vld [vmem:[#allocation5 + $0x4d8] sm:$0xf0] }
 0x110   :  { %2242 = vmatpush.bf16.msrb.mxu2 %v2884_v26  ;;  %v3940_v26 = vor.u32 %v4435_v16, %v3937_v17  ;;  %v3532_v34 = vor.u32 %v4333_v24, %v3529_v27  ;;  %v4357_v24 = vld [vmem:[#allocation5 + $0x644] sm:$0xf] }
 0x111   :  { %2255 = vmatpush.bf16.msrb.mxu3 %v3076_v31  ;;  %v3913_v31 = vld [vmem:[#allocation5 + $0x898] sm:$0xf0]  ;;  %v4405_v27 = vld [vmem:[#allocation5 + $0x7c4] sm:$0xf] }
 0x112   :  { %2217 = vmatpush.bf16.msrb.mxu0 %v3624_v40  ;;  %v4327_v40 = vld [vmem:[#allocation5 + $0x554] sm:$0xf]  ;;  %v3916_v41 = vor.u32 %v4429_v30, %v3913_v31  ;;  %v3820_v39 = vor.u32 %v4405_v27, %v3817_v28  ;;  %v4460_v52 = vld [vmem:[#allocation8 + $0x78] sm:$0xff]  ;;  %v4445_v27 = vld [vmem:[#allocation8] sm:$0xff] }
 0x113   :  { %2230 = vmatpush.bf16.msrb.mxu1 %v3816_v43  ;;  %v4375_v43 = vld [vmem:[#allocation5 + $0x6d4] sm:$0xf] }
 0x114   :  { %2243 = vmatpush.bf16.msrb.mxu2 %v2860_v44  ;;  %v3697_v44 = vld [vmem:[#allocation5 + $0x6e8] sm:$0xf0]  ;;  %v4255_v30 = vld [vmem:[#allocation5 + $0x314] sm:$0xf] }
 0x115   :  { %2256 = vmatpush.bf16.msrb.mxu3 %v3052_v49  ;;  %v3700_v49 = vor.u32 %v4375_v43, %v3697_v44  ;;  %v4399_v44 = vld [vmem:[#allocation5 + $0x794] sm:$0xf] }
 0x116   :  { %2218 = vmatpush.bf16.msrb.mxu0 %v3600_v59  ;;  %v4782_v46 = vpop.f32.mrf.mxu0  ;;  %v4417_v59 = vld [vmem:[#allocation5 + $0x824] sm:$0xf]  ;;  %v4470_v28 = vld [vmem:[#allocation8 + $0xc8] sm:$0xff] }
 0x117   :  { %2231 = vmatpush.bf16.msrb.mxu1 %v3792_v63  ;;  %v4784_v48 = vpop.f32.mrf.mxu1  ;;  %v3676_v63 = vor.u32 %v4369_v57, %v3673_v58  ;;  %v2013_v50 = vadd.f32 %v4782_v46, %v397_v38  ;;  %v4451_v57 = vld [vmem:[#allocation8 + $0x30] sm:$0xff]  ;;  %v4476_v58 = vld [vmem:[#allocation8 + $0xf8] sm:$0xff] }
 0x118   :  { %2244 = vmatpush.bf16.msrb.mxu2 %v2836_v0  ;;  %v4267_v0 = vld [vmem:[#allocation5 + $0x374] sm:$0xf] }
 0x119   :  { %2257 = vmatpush.bf16.msrb.mxu3 %v3028_v3  ;;  %2219 = vmatmul.bf16.vlgmr.msrb.gmra.mxu0 %v4736_v32  ;;  %v3868_v3 = vor.u32 %v4417_v59, %v3865_v60  ;;  %v3268_v13 = vor.u32 %v4267_v0, %v3265_v1  ;;  %v2026_v55 = vadd.f32 %v4784_v48, %v2013_v50  ;;  %v4459_v59 = vld [vmem:[#allocation8 + $0x70] sm:$0xff]  ;;  %v4450_v48 = vld [vmem:[#allocation8 + $0x28] sm:$0xff] }
 0x11a   :  { %2263 = vmatpush.bf16.msra.mxu0 %v3388_v5  ;;  %2232 = vmatmul.bf16.vlgmr.msrb.gmra.mxu1 %v4738_v35  ;;  %v3457_v5 = vld [vmem:[#allocation5 + $0x508] sm:$0xf0]  ;;  %v4467_v60 = vld [vmem:[#allocation8 + $0xb0] sm:$0xff] }
 0x11b   :  { %2276 = vmatpush.bf16.msra.mxu1 %v3580_v6  ;;  %2245 = vmatmul.bf16.vlgmr.msrb.gmra.mxu2 %v4726_v9  ;;  %v3889_v9 = vld [vmem:[#allocation5 + $0x868] sm:$0xf0]  ;;  %v4363_v6 = vld [vmem:[#allocation5 + $0x674] sm:$0xf]  ;;  %v3460_v16 = vor.u32 %v4315_v2, %v3457_v5  ;;  %v4448_v5 = vld [vmem:[#allocation8 + $0x18] sm:$0xff] }
 0x11c   :  { %2289 = vmatpush.bf16.msra.mxu2 %v3772_v7  ;;  %2258 = vmatmul.bf16.vlgmr.msrb.gmra.mxu3 %v4733_v25  ;;  %v3508_v25 = vor.u32 %v4327_v40, %v3505_v42  ;;  %v3892_v53 = vor.u32 %v4423_v45, %v3889_v9  ;;  %v3649_v7 = vld [vmem:[#allocation5 + $0x688] sm:$0xf0] }
 0x11d   :  { %2302 = vmatpush.bf16.msra.mxu3 %v3964_v12  ;;  %v3652_v17 = vor.u32 %v4363_v6, %v3649_v7  ;;  %v3409_v40 = vld [vmem:[#allocation5 + $0x4a8] sm:$0xf0]  ;;  %v4456_v7 = vld [vmem:[#allocation8 + $0x58] sm:$0xff] }
 0x11e   :  { %2264 = vmatpush.bf16.msra.mxu0 %v3364_v18  ;;  %v4786_v54 = vpop.f32.mrf.mxu2  ;;  %v2014_v12 = vpop.f32.mrf.mxu0  ;;  %v4261_v18 = vld [vmem:[#allocation5 + $0x344] sm:$0xf]  ;;  %v3601_v42 = vld [vmem:[#allocation5 + $0x628] sm:$0xf0] }
 0x11f   :  { %2277 = vmatpush.bf16.msra.mxu1 %v3556_v19  ;;  %v4788_v36 = vpop.f32.mrf.mxu3  ;;  %v2027_v14 = vpop.f32.mrf.mxu1  ;;  %v3241_v19 = vld [vmem:[#allocation5 + $0x358] sm:$0xf0]  ;;  %v3793_v45 = vld [vmem:[#allocation5 + $0x7a8] sm:$0xf0]  ;;  %v2039_v46 = vadd.f32 %v4786_v54, %v2026_v55 }
 0x120   :  { %2290 = vmatpush.bf16.msra.mxu2 %v3748_v20  ;;  %v4309_v20 = vld [vmem:[#allocation5 + $0x4c4] sm:$0xf]  ;;  %v3244_v29 = vor.u32 %v4261_v18, %v3241_v19  ;;  %v3796_v51 = vor.u32 %v4399_v44, %v3793_v45  ;;  %v4463_v18 = vld [vmem:[#allocation8 + $0x90] sm:$0xff]  ;;  %v4446_v19 = vld [vmem:[#allocation8 + $0x8] sm:$0xff] }
 0x121   :  { %2303 = vmatpush.bf16.msra.mxu3 %v3940_v26  ;;  %v3625_v26 = vld [vmem:[#allocation5 + $0x658] sm:$0xf0]  ;;  %v3436_v31 = vor.u32 %v4309_v20, %v3433_v23  ;;  %v2052_v0 = vadd.f32 %v4788_v36, %v2039_v46  ;;  %v4465_v2 = vld [vmem:[#allocation8 + $0xa0] sm:$0xff]  ;;  %v4462_v23 = vld [vmem:[#allocation8 + $0x88] sm:$0xff] }
 0x122   :  { %2265 = vmatpush.bf16.msra.mxu0 %v3340_v33  ;;  %v3628_v33 = vor.u32 %v4357_v24, %v3625_v26  ;;  %v4473_v6 = vld [vmem:[#allocation8 + $0xe0] sm:$0xff]  ;;  %v4464_v54 = vld [vmem:[#allocation8 + $0x98] sm:$0xff]  ;;  %v4471_v20 = vld [vmem:[#allocation8 + $0xd0] sm:$0xff] }
 0x123   :  { %2278 = vmatpush.bf16.msra.mxu1 %v3532_v34  ;;  %v3217_v34 = vld [vmem:[#allocation5 + $0x328] sm:$0xf0]  ;;  %v4483_v45 = vld [vmem:[#allocation8 + $0x130] sm:$0xff] }
 0x124   :  { %2291 = vmatpush.bf16.msra.mxu2 %v3724_v37  ;;  %v4303_v37 = vld [vmem:[#allocation5 + $0x494] sm:$0xf] }
 0x125   :  { %2304 = vmatpush.bf16.msra.mxu3 %v3916_v41  ;;  %v4351_v41 = vld [vmem:[#allocation5 + $0x614] sm:$0xf] }
 0x126   :  { %2266 = vmatpush.bf16.msra.mxu0 %v3316_v47  ;;  %v2040_v43 = vpop.f32.mrf.mxu2  ;;  %v3220_v47 = vor.u32 %v4255_v30, %v3217_v34  ;;  %v4461_v30 = vld [vmem:[#allocation8 + $0x80] sm:$0xff] }
 0x127   :  { %2279 = vmatpush.bf16.msra.mxu1 %v3508_v25  ;;  %v2053_v9 = vpop.f32.mrf.mxu3  ;;  %v3412_v25 = vor.u32 %v4303_v37, %v3409_v40  ;;  %v4801_v37 = vld [vmem:[#allocation7] sm:$0x3f]  ;;  %v4469_v40 = vld [vmem:[#allocation8 + $0xc0] sm:$0xff] }
 0x128   :  { %2292 = vmatpush.bf16.msra.mxu2 %v3700_v49  ;;  %v3604_v49 = vor.u32 %v4351_v41, %v3601_v42 }
 0x129   :  { %2305 = vmatpush.bf16.msra.mxu3 %v3892_v53  ;;  %v4468_v53 = vld [vmem:[#allocation8 + $0xb8] sm:$0xff] }
 0x12a   :  { %2267 = vmatpush.bf16.msra.mxu0 %v3292_v61  ;;  %v4475_v61 = vld [vmem:[#allocation8 + $0xf0] sm:$0xff] }
 0x12b   :  { %2280 = vmatpush.bf16.msra.mxu1 %v3484_v62  ;;  %v4458_v62 = vld [vmem:[#allocation8 + $0x68] sm:$0xff] }
 0x12c   :  { %2293 = vmatpush.bf16.msra.mxu2 %v3676_v63  ;;  %v4466_v63 = vld [vmem:[#allocation8 + $0xa8] sm:$0xff] }
 0x12d   :  { %2306 = vmatpush.bf16.msra.mxu3 %v3868_v3 }
 0x12e   :  { %2268 = vmatpush.bf16.msra.mxu0 %v3268_v13  ;;  %v4447_v13 = vld [vmem:[#allocation8 + $0x10] sm:$0xff] }
 0x12f   :  { %2281 = vmatpush.bf16.msra.mxu1 %v3460_v16  ;;  %v4472_v16 = vld [vmem:[#allocation8 + $0xd8] sm:$0xff] }
 0x130   :  { %2294 = vmatpush.bf16.msra.mxu2 %v3652_v17  ;;  %v4455_v17 = vld [vmem:[#allocation8 + $0x50] sm:$0xff] }
 0x131   :  { %2307 = vmatpush.bf16.msra.mxu3 %v3844_v21  ;;  %v4454_v21 = vld [vmem:[#allocation8 + $0x48] sm:$0xff] }
 0x132   :  { %2269 = vmatpush.bf16.msra.mxu0 %v3244_v29 }
 0x133   :  { %2282 = vmatpush.bf16.msra.mxu1 %v3436_v31 }
 0x134   :  { %2295 = vmatpush.bf16.msra.mxu2 %v3628_v33  ;;  %v4484_v33 = vld [vmem:[#allocation8 + $0x138] sm:$0xff] }
 0x135   :  { %2308 = vmatpush.bf16.msra.mxu3 %v3820_v39 }
 0x136   :  { %2270 = vmatpush.bf16.msra.mxu0 %v3220_v47  ;;  %v2064_v1 = vpop.f32.mrf.mxu0 }
 0x137   :  { %2283 = vmatpush.bf16.msra.mxu1 %v3412_v25  ;;  %v2065_v3 = vadd.f32 %v2064_v1, %v2052_v0  ;;  %v4482_v25 = vld [vmem:[#allocation8 + $0x128] sm:$0xff] }
 0x138   :  { %2296 = vmatpush.bf16.msra.mxu2 %v3604_v49  ;;  %v4478_v0 = vld [vmem:[#allocation8 + $0x108] sm:$0xff] }
 0x139   :  { %2309 = vmatpush.bf16.msra.mxu3 %v3796_v51  ;;  %2271 = vmatmul.bf16.vlgmr.msra.gmra.mxu0 %v4724_v8  ;;  %v4449_v8 = vld [vmem:[#allocation8 + $0x20] sm:$0xff] }
 0x13a   :  { %2715 = vmatpush.bf16.msrb.mxu0 %v4452_v56  ;;  %2284 = vmatmul.bf16.vlgmr.msra.gmra.mxu1 %v4728_v15  ;;  %v2077_v15 = vpop.f32.mrf.mxu1 }
 0x13b   :  { %2728 = vmatpush.bf16.msrb.mxu1 %v4460_v52  ;;  %2297 = vmatmul.bf16.vlgmr.msra.gmra.mxu2 %v4736_v32  ;;  %v4474_v32 = vld [vmem:[#allocation8 + $0xe8] sm:$0xff]  ;;  %v2078_v11 = vadd.f32 %v2077_v15, %v2065_v3  ;;  %v4481_v52 = vld [vmem:[#allocation8 + $0x120] sm:$0xff]  ;;  %v4492_v3 = vld [vmem:[#allocation8 + $0x178] sm:$0xff] }
 0x13c   :  { %2741 = vmatpush.bf16.msrb.mxu2 %v4468_v53  ;;  %2310 = vmatmul.bf16.vlgmr.msra.gmra.mxu3 %v4738_v35  ;;  %v4457_v35 = vld [vmem:[#allocation8 + $0x60] sm:$0xff] }
 0x13d   :  { %2754 = vmatpush.bf16.msrb.mxu3 %v4476_v58  ;;  %4504 = vtanh.f32 %v2078_v11  ;;  %v4480_v58 = vld [vmem:[#allocation8 + $0x118] sm:$0xff] }
 0x13e   :  { %2716 = vmatpush.bf16.msrb.mxu0 %v4451_v57  ;;  %v2090_v10 = vpop.f32.mrf.mxu2  ;;  %v2066_v36 = vpop.f32.mrf.mxu0  ;;  %4506 = vtanh.f32 %v4766_v4  ;;  %v4453_v4 = vld [vmem:[#allocation8 + $0x40] sm:$0xff] }
 0x13f   :  { %2729 = vmatpush.bf16.msrb.mxu1 %v4459_v59  ;;  %v2103_v12 = vpop.f32.mrf.mxu3  ;;  %4508 = vtanh.f32 %v4776_v22  ;;  %v398_v22 = vperm.slane %v4801_v37, 3 }
 0x140   :  { %2742 = vmatpush.bf16.msrb.mxu2 %v4467_v60 }
 0x141   :  { %2755 = vmatpush.bf16.msrb.mxu3 %v4475_v61  ;;  %v2091_v42 = vadd.f32 %v2090_v10, %v398_v22  ;;  %v4490_v10 = vld [vmem:[#allocation8 + $0x168] sm:$0xff] }
 0x142   :  { %2717 = vmatpush.bf16.msrb.mxu0 %v4450_v48  ;;  %v2079_v14 = vpop.f32.mrf.mxu1 }
 0x143   :  { %2730 = vmatpush.bf16.msrb.mxu1 %v4458_v62  ;;  %v4505_v29 = vpop.eup %4504  ;;  %v2104_v43 = vadd.f32 %v2103_v12, %v2091_v42 }
 0x144   :  { %2743 = vmatpush.bf16.msrb.mxu2 %v4466_v63  ;;  %v4507_v31 = vpop.eup %4506  ;;  %v2323_v38 = vpack.c.bf16 %v4505_v29, %v4505_v29  ;;  %v4479_v63 = vld [vmem:[#allocation8 + $0x110] sm:$0xff] }
 0x145   :  { %2756 = vmatpush.bf16.msrb.mxu3 %v4474_v32  ;;  %v4509_v34 = vpop.eup %4508  ;;  %v2321_v39 = vpack.c.bf16 %v4507_v31, %v4507_v31 }
 0x146   :  { %2718 = vmatpush.bf16.msrb.mxu0 %v4449_v8  ;;  %v2092_v24 = vpop.f32.mrf.mxu2  ;;  %v2322_v41 = vpack.c.bf16 %v4509_v34, %v4509_v34 }
 0x147   :  { %2731 = vmatpush.bf16.msrb.mxu1 %v4457_v35  ;;  %v2105_v26 = vpop.f32.mrf.mxu3  ;;  %v4477_v35 = vld [vmem:[#allocation8 + $0x100] sm:$0xff] }
 0x148   :  { %2744 = vmatpush.bf16.msrb.mxu2 %v4465_v2  ;;  %v399_v2 = vperm.slane %v4801_v37, 4 }
 0x149   :  { %2757 = vmatpush.bf16.msrb.mxu3 %v4473_v6 }
 0x14a   :  { %2719 = vmatpush.bf16.msrb.mxu0 %v4448_v5  ;;  %v4491_v5 = vld [vmem:[#allocation8 + $0x170] sm:$0xff] }
 0x14b   :  { %2732 = vmatpush.bf16.msrb.mxu1 %v4456_v7 }
 0x14c   :  { %2745 = vmatpush.bf16.msrb.mxu2 %v4464_v54 }
 0x14d   :  { %2758 = vmatpush.bf16.msrb.mxu3 %v4472_v16 }
 0x14e   :  { %2720 = vmatpush.bf16.msrb.mxu0 %v4447_v13  ;;  %v4489_v13 = vld [vmem:[#allocation8 + $0x160] sm:$0xff] }
 0x14f   :  { %2733 = vmatpush.bf16.msrb.mxu1 %v4455_v17 }
 0x150   :  { %2746 = vmatpush.bf16.msrb.mxu2 %v4463_v18  ;;  %v4488_v18 = vld [vmem:[#allocation8 + $0x158] sm:$0xff] }
 0x151   :  { %2759 = vmatpush.bf16.msrb.mxu3 %v4471_v20  ;;  %v4487_v20 = vld [vmem:[#allocation8 + $0x150] sm:$0xff] }
 0x152   :  { %2721 = vmatpush.bf16.msrb.mxu0 %v4446_v19 }
 0x153   :  { %2734 = vmatpush.bf16.msrb.mxu1 %v4454_v21 }
 0x154   :  { %2747 = vmatpush.bf16.msrb.mxu2 %v4462_v23 }
 0x155   :  { %2760 = vmatpush.bf16.msrb.mxu3 %v4470_v28 }
 0x156   :  { %2722 = vmatpush.bf16.msrb.mxu0 %v4445_v27  ;;  %v2116_v44 = vpop.f32.mrf.mxu0  ;;  %v4486_v27 = vld [vmem:[#allocation8 + $0x148] sm:$0xff] }
 0x157   :  { %2735 = vmatpush.bf16.msrb.mxu1 %v4453_v4  ;;  %v2117_v9 = vadd.f32 %v2116_v44, %v2104_v43  ;;  %v2129_v47 = vpop.f32.mrf.mxu1  ;;  %v4485_v4 = vld [vmem:[#allocation8 + $0x140] sm:$0xff] }
 0x158   :  { %2748 = vmatpush.bf16.msrb.mxu2 %v4461_v30 }
 0x159   :  { %2723 = vmatmul.bf16.vlgmr.msrb.gmra.mxu0 %v2321_v39  ;;  %2761 = vmatpush.bf16.msrb.mxu3 %v4469_v40  ;;  %v2130_v49 = vadd.f32 %v2129_v47, %v2117_v9 }
 0x15a   :  { %2767 = vmatpush.bf16.msra.mxu0 %v4484_v33  ;;  %2736 = vmatmul.bf16.vlgmr.msrb.gmra.mxu1 %v2322_v41  ;;  %v400_v33 = vperm.slane %v4801_v37, 5 }
 0x15b   :  { %2749 = vmatmul.bf16.vlgmr.msrb.gmra.mxu2 %v2323_v38  ;;  %2780 = vmatpush.bf16.msra.mxu1 %v4492_v3 }
 0x15e   :  { %2768 = vmatpush.bf16.msra.mxu0 %v4483_v45  ;;  %v2142_v50 = vpop.f32.mrf.mxu2  ;;  %v2118_v55 = vpop.f32.mrf.mxu0 }
 0x15f   :  { %v2143_v51 = vadd.f32 %v2142_v50, %v2130_v49  ;;  %v2155_v56 = vpop.f32.mrf.mxu3  ;;  %v2131_v57 = vpop.f32.mrf.mxu1  ;;  %2781 = vmatpush.bf16.msra.mxu1 %v4491_v5 }
 0x161   :  { %v2156_v53 = vadd.f32 %v2155_v56, %v2143_v51  ;;  %v4503_v56 = vld [vmem:[#allocation10] ss:$0 sm:$0xff] }
 0x162   :  { %2769 = vmatpush.bf16.msra.mxu0 %v4482_v25 }
 0x163   :  { %4510 = vtanh.f32 %v2156_v53  ;;  %2782 = vmatpush.bf16.msra.mxu1 %v4490_v10 }
 0x166   :  { %2770 = vmatpush.bf16.msra.mxu0 %v4481_v52  ;;  %v2144_v59 = vpop.f32.mrf.mxu2 }
 0x167   :  { %v2157_v60 = vpop.f32.mrf.mxu3  ;;  %2783 = vmatpush.bf16.msra.mxu1 %v4489_v13 }
 0x169   :  { %v4511_v46 = vpop.eup %4510 }
 0x16a   :  { %2771 = vmatpush.bf16.msra.mxu0 %v4480_v58  ;;  %v2324_v48 = vpack.c.bf16 %v4511_v46, %v4511_v46 }
 0x16b   :  { %2784 = vmatpush.bf16.msra.mxu1 %v4488_v18 }
 0x16c   :  { %2762 = vmatmul.bf16.vlgmr.msrb.gmra.mxu3 %v2324_v48 }
 0x16e   :  { %2772 = vmatpush.bf16.msra.mxu0 %v4479_v63 }
 0x16f   :  { %2785 = vmatpush.bf16.msra.mxu1 %v4487_v20 }
 0x172   :  { %2773 = vmatpush.bf16.msra.mxu0 %v4478_v0 }
 0x173   :  { %2786 = vmatpush.bf16.msra.mxu1 %v4486_v27 }
 0x176   :  { %v2168_v61 = vpop.f32.mrf.mxu0  ;;  %2774 = vmatpush.bf16.msra.mxu0 %v4477_v35 }
 0x177   :  { %v2181_v62 = vpop.f32.mrf.mxu1  ;;  %v2169_v6 = vadd.f32 %v2168_v61, %v399_v2  ;;  %2787 = vmatpush.bf16.msra.mxu1 %v4485_v4 }
 0x179   :  { %v2182_v11 = vadd.f32 %v2181_v62, %v2169_v6 }
 0x17e   :  { %v2194_v1 = vpop.f32.mrf.mxu2  ;;  %v2170_v8 = vpop.f32.mrf.mxu0 }
 0x17f   :  { %v2207_v15 = vpop.f32.mrf.mxu3  ;;  %v2183_v32 = vpop.f32.mrf.mxu1  ;;  %v2195_v12 = vadd.f32 %v2194_v1, %v2182_v11 }
 0x181   :  { %v2208_v36 = vadd.f32 %v2207_v15, %v2195_v12 }
 0x186   :  { %v2196_v7 = vpop.f32.mrf.mxu2 }
 0x187   :  { %v2209_v54 = vpop.f32.mrf.mxu3 }
 0x196   :  { %v2220_v14 = vpop.f32.mrf.mxu0 }
 0x197   :  { %v2221_v16 = vadd.f32 %v2220_v14, %v2208_v36  ;;  %v2233_v17 = vpop.f32.mrf.mxu1 }
 0x199   :  { %v2234_v19 = vadd.f32 %v2233_v17, %v2221_v16 }
 0x19b   :  { %4512 = vtanh.f32 %v2234_v19 }
 0x19e   :  { %v2246_v21 = vpop.f32.mrf.mxu2  ;;  %v2222_v24 = vpop.f32.mrf.mxu0 }
 0x19f   :  { %v2259_v23 = vpop.f32.mrf.mxu3  ;;  %v2235_v26 = vpop.f32.mrf.mxu1  ;;  %v2247_v34 = vadd.f32 %v2246_v21, %v400_v33 }
 0x1a1   :  { %v4513_v28 = vpop.eup %4512  ;;  %v2260_v22 = vadd.f32 %v2259_v23, %v2247_v34 }
 0x1a2   :  { %v2325_v29 = vpack.c.bf16 %v4513_v28, %v4513_v28 }
 0x1a4   :  { %2775 = vmatmul.bf16.vlgmr.msra.gmra.mxu0 %v2325_v29 }
 0x1a6   :  { %v2248_v30 = vpop.f32.mrf.mxu2 }
 0x1a7   :  { %v2261_v31 = vpop.f32.mrf.mxu3 }
 0x1b6   :  { %v2272_v38 = vpop.f32.mrf.mxu0 }
 0x1b7   :  { %v2285_v39 = vpop.f32.mrf.mxu1  ;;  %v2273_v40 = vadd.f32 %v2272_v38, %v2260_v22 }
 0x1b9   :  { %v2286_v41 = vadd.f32 %v2285_v39, %v2273_v40 }
 0x1be   :  { %v2298_v42 = vpop.f32.mrf.mxu2  ;;  %v2274_v45 = vpop.f32.mrf.mxu0 }
 0x1bf   :  { %v2311_v43 = vpop.f32.mrf.mxu3  ;;  %v2299_v44 = vadd.f32 %v2298_v42, %v2286_v41  ;;  %v2287_v9 = vpop.f32.mrf.mxu1 }
 0x1c1   :  { %v2312_v47 = vadd.f32 %v2311_v43, %v2299_v44 }
 0x1c3   :  { %4514 = vtanh.f32 %v2312_v47 }
 0x1c6   :  { %v2300_v25 = vpop.f32.mrf.mxu2 }
 0x1c7   :  { %v2313_v49 = vpop.f32.mrf.mxu3 }
 0x1c9   :  { %v4515_v50 = vpop.eup %4514 }
 0x1ca   :  { %v2326_v51 = vpack.c.bf16 %v4515_v50, %v4515_v50 }
 0x1cc   :  { %2788 = vmatmul.bf16.vlgmr.msra.gmra.mxu1 %v2326_v51 }
 0x1d6   :  { %v2724_v37 = vpop.f32.mrf.mxu0 }
 0x1d7   :  { %v2725_v52 = vadd.f32 %v4503_v56, %v2724_v37  ;;  %v2737_v53 = vpop.f32.mrf.mxu1 }
 0x1d9   :  { %v2738_v55 = vadd.f32 %v2737_v53, %v2725_v52 }
 0x1de   :  { %v2750_v57 = vpop.f32.mrf.mxu2  ;;  %v2726_v59 = vpop.f32.mrf.mxu0 }
 0x1df   :  { %v2751_v58 = vadd.f32 %v2750_v57, %v2738_v55  ;;  %v2739_v60 = vpop.f32.mrf.mxu1 }
 0x1e6   :  { %v2752_v46 = vpop.f32.mrf.mxu2 }
 0x1ef   :  { %v2763_v48 = vpop.f32.mrf.mxu3 }
 0x1f0   :  { %v2764_v61 = vadd.f32 %v2763_v48, %v2751_v58 }
 0x1f7   :  { %v2765_v62 = vpop.f32.mrf.mxu3 }
 0x221   :  { %v2776_v63 = vpop.f32.mrf.mxu0 }
 0x222   :  { %v2777_v1 = vadd.f32 %v2776_v63, %v2764_v61 }
 0x229   :  { %v2778_v0 = vpop.f32.mrf.mxu0 }
 0x249   :  { %v2789_v8 = vpop.f32.mrf.mxu1 }
 0x24a   :  { %v2790_v15 = vadd.f32 %v2789_v8, %v2777_v1 }
 0x24c   :  { %2793 = vst [vmem:[#allocation11] sm:$0xff] %v2790_v15 }
 0x24d   :  { %2804 = dma.vmem_to_hbm [thread:$0]  %s2800_s4, 128, %s2802_s21, [#allocation4]  }
 0x251   :  { %v2791_v32 = vpop.f32.mrf.mxu1 }
 0x252   :  { %4667 = dma.done.wait [#allocation4], 128  }
 0x253   :  { %4668 = vsyncadd [#allocation4], 4294967168 }
 0x254   :  { %2809 = vsyncpa [#allocation3], 1 }
 0x255   :  { %2810 = vsyncpa [#allocation6], 1 }
 0x256   :  { %2811 = vsyncpa [#allocation9], 1 }
 0x257   :  { %2812 = vsyncpa [#allocation4], 1 }

</bundles_post_ra>
